<compile_context>
chip_gen: v7x
topology: tpu7x:2x2x1
jax: 0.10.0
libtpu: 0.0.40
codegen_flags: <defaults>
</compile_context>

<pallas_src>
import math
import functools

import jax
import jax.numpy as jnp
from jax.experimental import pallas as pl
from jax.experimental.pallas import tpu as pltpu

MEX_C = 2.0 / (math.sqrt(3.0) * math.pi ** 0.25)


def _round_up(x, m):
    return (x + m - 1) // m * m


def _wavkan_fused_kernel(x_ref, aux_ref, wtap_ref, trans_ref, invs_ref,
                         tot_ref, s1_ref, s2_ref, feat_ref, acc_ref,
                         *, cout, cin, tr, ext, tap_offsets):
    """Fused SiLU/psi + (base conv + wavelet convs + final 1x1) for one tile.

    One grid step handles TR consecutive positions of one batch's flattened
    *padded* spatial grid (lane-dense, TR % 128 == 0).

    x_ref    : [1, Cin, Np_ext]   bf16  zero-padded input, per-batch flat
    aux_ref  : [2, Np_ext]        f32   row0: conv-pad validity of input taps
                                        row1: validity as a real output pos
    wtap_ref : [K*K, Cout, F]     bf16  per-tap fused weights, F=(1+Cout)*Cin
    trans_ref: [Cin, Cout]        f32   translation per (ci, co)
    invs_ref : [Cin, Cout]        f32   1/scale per (ci, co)
    tot_ref  : [1, Cout, TR]      bf16  un-normalized output (base + wavelet)
    s1_ref   : [1, 1, 1, Cout]    f32   per-tile sum  (BN partial)
    s2_ref   : [1, 1, 1, Cout]    f32   per-tile sumsq (BN partial)
    feat_ref : [F, EXT]           bf16  VMEM scratch: silu + psi features
    acc_ref  : [Cout, TR]         f32   VMEM scratch: matmul accumulator
    """
    t = pl.program_id(1)
    start = pl.multiple_of(t * tr, 128)

    x_ext = x_ref[0, :, pl.ds(start, ext)].astype(jnp.float32)    # [Cin, EXT]
    pmask = aux_ref[0:1, pl.ds(start, ext)]                       # [1,  EXT]

    # --- base features: SiLU (overflow-safe tanh form).  silu(0) = 0, so the
    # conv zero padding needs no mask on this block.
    silu = x_ext * (0.5 * (jnp.tanh(0.5 * x_ext) + 1.0))
    feat_ref[0:cin, :] = silu.astype(jnp.bfloat16)

    # --- wavelet features: mexican-hat psi per (co, ci), evaluated ONCE on
    # the raw padded input (K*K dedup).  PyTorch zero-pads the *transformed*
    # tensor, and psi(0) != 0, so padded taps are explicitly masked to 0.
    for co in range(cout):
        z = (x_ext - trans_ref[:, co:co + 1]) * invs_ref[:, co:co + 1]
        zz = z * z
        psi = (zz - 1.0) * jnp.exp(-0.5 * zz) * pmask   # MEX_C folded in wtap
        feat_ref[(1 + co) * cin:(2 + co) * cin, :] = psi.astype(jnp.bfloat16)

    # --- conv (base + wavelet + final 1x1) as K*K shifted-tap MXU matmuls:
    # on the padded-grid flattening, tap (kh, kw) is a static lane offset
    # kh*Wp + kw, so each tap is a static slice of the feature scratch.
    for ti, off in enumerate(tap_offsets):
        contrib = jnp.dot(wtap_ref[ti], feat_ref[:, off:off + tr],
                          preferred_element_type=jnp.float32)     # [Cout, TR]
        if ti == 0:
            acc_ref[...] = contrib
        else:
            acc_ref[...] += contrib

    total = acc_ref[...]
    tot_ref[...] = total.reshape(1, cout, tr).astype(tot_ref.dtype)

    # --- BatchNorm partial statistics over real output positions only
    # (padded-grid garbage columns/rows and tail padding are masked out).
    ovalid = aux_ref[1:2, pl.ds(start, tr)]                       # [1, TR]
    tm = total * ovalid
    s1_ref[...] = jnp.sum(tm, axis=1).reshape(1, 1, 1, cout)
    s2_ref[...] = jnp.sum(tm * total, axis=1).reshape(1, 1, 1, cout)


def _bn_apply_kernel(mr_ref, tot_ref, o_ref):
    """Second pass: apply the (wrapper-reduced) global mean/rstd to one tile."""
    mean = mr_ref[:, 0:1]                                         # [Cout, 1]
    rstd = mr_ref[:, 1:2]
    xv = tot_ref[0].astype(jnp.float32)                           # [Cout, TR]
    o_ref[...] = ((xv - mean) * rstd).reshape(o_ref.shape).astype(o_ref.dtype)


def wavkan_layer_nd(x, w_base, w_wav, w_final, scale, trans, *,
                    padding, eps=1e-5, tile_rows=8192):
    """WavKANLayerND.forward (groups=1, stride=1, dilation=1, dropout=0)."""
    B, Cin, H, W = x.shape
    Cout, _, K, _ = w_base.shape
    pad = int(padding)
    Hp, Wp = H + 2 * pad, W + 2 * pad
    OH, OW = Hp - K + 1, Wp - K + 1
    Np = Hp * Wp
    F = (1 + Cout) * Cin

    # Lane tile over the per-batch padded-flat grid (multiple of 128, capped
    # at one whole image).  Grid = (B, n_tiles), both parallel.
    TR = min(_round_up(Np, 128), max(128, (tile_rows // 128) * 128))
    n_tiles = -(-Np // TR)
    Ntr = n_tiles * TR
    HALO = (K - 1) * Wp + (K - 1)           # max tap offset on the flat grid
    HALO_pad = _round_up(max(HALO, 1), 128)
    EXT = TR + HALO_pad
    Np_ext = Ntr + HALO_pad                 # every extended window in-bounds

    # Zero-padded input, flattened per batch, bf16 (halves the HBM read).
    xp = jnp.pad(x, ((0, 0), (0, 0), (pad, pad), (pad, pad)))
    xflat = jnp.pad(xp.reshape(B, Cin, Np),
                    ((0, 0), (0, 0), (0, Np_ext - Np))).astype(jnp.bfloat16)

    # Tiny per-position masks (identical for every batch):
    #  row0: input tap lies inside the original HxW (conv zero-padding mask)
    #  row1: position is a real output position (for BatchNorm statistics)
    q = jnp.arange(Np_ext, dtype=jnp.int32)
    qh, qw = q // Wp, q % Wp
    in_valid = ((qh >= pad) & (qh < H + pad) & (qw >= pad) & (qw < W + pad)
                & (q < Np)).astype(jnp.float32)
    out_valid = ((qh < OH) & (qw < OW) & (q < Np)).astype(jnp.float32)
    aux = jnp.stack((in_valid, out_valid), axis=0)                # [2, Np_ext]

    # Fused per-tap weights W_tap[t, o, f]:
    #   f in [0, Cin)            -> base conv:   w_base[o, ci, kh, kw]
    #   f = Cin + co*Cin + ci    -> wavelet path: wft[o, co]*MEX_C*w_wav[co, ci, kh, kw]
    wb_t = w_base.transpose(2, 3, 0, 1).reshape(K * K, Cout, Cin)
    ww_t = (MEX_C * w_wav).transpose(2, 3, 0, 1).reshape(K * K, Cout, Cin)
    wft2 = w_final[:, :, 0, 0]                                    # [Cout, Cout]
    wav_t = jnp.einsum('oc,tci->toci', wft2, ww_t).reshape(K * K, Cout,
                                                           Cout * Cin)
    wtap = jnp.concatenate((wb_t, wav_t), axis=2).astype(jnp.bfloat16)

    trans_t = trans.T.astype(jnp.float32)                         # [Cin, Cout]
    invs_t = (1.0 / scale).T.astype(jnp.float32)                  # [Cin, Cout]

    tap_offsets = tuple(kh * Wp + kw for kh in range(K) for kw in range(K))

    # Per-tile VMEM: x block 2*Cin*Np_ext*2B + feat F*EXT*2B + acc Cout*TR*4B
    # + tot 2*Cout*TR*2B — far below the 32 MiB scoped limit at these sizes
    # (and below v7x's 64 MiB physical VMEM; re-derive if Cin*Hp*Wp grows).
    cparams = pltpu.CompilerParams(
        dimension_semantics=("parallel", "parallel"),
        vmem_limit_bytes=32 * 1024 * 1024)

    kern1 = functools.partial(_wavkan_fused_kernel, cout=Cout, cin=Cin,
                              tr=TR, ext=EXT, tap_offsets=tap_offsets)
    tot, s1p, s2p = pl.pallas_call(
        kern1,
        out_shape=(jax.ShapeDtypeStruct((B, Cout, Ntr), jnp.bfloat16),
                   jax.ShapeDtypeStruct((B, n_tiles, 1, Cout), jnp.float32),
                   jax.ShapeDtypeStruct((B, n_tiles, 1, Cout), jnp.float32)),
        grid=(B, n_tiles),
        in_specs=[
            pl.BlockSpec((1, Cin, Np_ext), lambda b, t: (b, 0, 0)),   # input
            pl.BlockSpec((2, Np_ext), lambda b, t: (0, 0)),           # masks
            pl.BlockSpec((K * K, Cout, F), lambda b, t: (0, 0, 0)),   # weights
            pl.BlockSpec((Cin, Cout), lambda b, t: (0, 0)),           # trans
            pl.BlockSpec((Cin, Cout), lambda b, t: (0, 0)),           # 1/scale
        ],
        out_specs=(pl.BlockSpec((1, Cout, TR), lambda b, t: (b, 0, t)),
                   pl.BlockSpec((1, 1, 1, Cout), lambda b, t: (b, t, 0, 0)),
                   pl.BlockSpec((1, 1, 1, Cout), lambda b, t: (b, t, 0, 0))),
        scratch_shapes=[pltpu.VMEM((F, EXT), jnp.bfloat16),
                        pltpu.VMEM((Cout, TR), jnp.float32)],
        compiler_params=cparams,
    )(xflat, aux, wtap, trans_t, invs_t)

    # Global BatchNorm statistics (training-mode batch stats), reduced once in
    # the wrapper from the tiny per-tile partials (review item 7).
    count = float(B * OH * OW)
    s1 = jnp.sum(s1p, axis=(0, 1, 2))                             # [Cout]
    s2 = jnp.sum(s2p, axis=(0, 1, 2))
    mean = s1 / count
    var = s2 / count - mean * mean
    rstd = jax.lax.rsqrt(var + eps)
    mr = jnp.stack((mean, rstd), axis=1)                          # [Cout, 2]

    out_flat = pl.pallas_call(
        _bn_apply_kernel,
        out_shape=jax.ShapeDtypeStruct((B, Cout, Ntr), jnp.float32),
        grid=(B, n_tiles),
        in_specs=[pl.BlockSpec((Cout, 2), lambda b, t: (0, 0)),
                  pl.BlockSpec((1, Cout, TR), lambda b, t: (b, 0, t))],
        out_specs=pl.BlockSpec((1, Cout, TR), lambda b, t: (b, 0, t)),
        compiler_params=cparams,
    )(mr, tot)

    # Un-embed the real outputs from the padded grid: slice + reshape only,
    # no transpose (review item 6).
    out = out_flat[:, :, :Np].reshape(B, Cout, Hp, Wp)[:, :, :OH, :OW]
    return out


def _mexican_hat(z):
    return MEX_C * (z * z - 1.0) * jnp.exp(-0.5 * z * z)


def _reference_forward(x, w_base, w_wav, w_final, scale, trans, pad, eps=1e-5):
    """Pure-JAX reference mirroring the PyTorch forward exactly (NCHW, f32)."""
    dn = ("NCHW", "OIHW", "NCHW")
    prec = jax.lax.Precision.HIGHEST
    Cout = w_base.shape[0]
    act = x * jax.nn.sigmoid(x)
    base = jax.lax.conv_general_dilated(act, w_base, (1, 1),
                                        [(pad, pad), (pad, pad)],
                                        dimension_numbers=dn, precision=prec)
    outs = []
    for co in range(Cout):
        z = (x - trans[co][None, :, None, None]) / scale[co][None, :, None, None]
        psi = _mexican_hat(z)
        o = jax.lax.conv_general_dilated(psi, w_wav[co][None], (1, 1),
                                         [(pad, pad), (pad, pad)],
                                         dimension_numbers=dn, precision=prec)
        outs.append(o)
    combined = jnp.concatenate(outs, axis=1)
    wav = jax.lax.conv_general_dilated(combined, w_final, (1, 1),
                                       [(0, 0), (0, 0)],
                                       dimension_numbers=dn, precision=prec)
    total = base + wav
    mean = total.mean(axis=(0, 2, 3), keepdims=True)
    var = ((total - mean) ** 2).mean(axis=(0, 2, 3), keepdims=True)
    return (total - mean) * jax.lax.rsqrt(var + eps)


if __name__ == "__main__":
    B, Cin, Cout, H, W, K, PAD = 2, 4, 8, 16, 16, 3, 1
    key = jax.random.PRNGKey(0)
    k = jax.random.split(key, 6)
    x = jax.random.normal(k[0], (B, Cin, H, W), jnp.float32)

    # Parameters (shapes follow the PyTorch module __init__; deterministic
    # synthetic inits with kaiming-uniform-like bounds).
    fan_in = Cin * K * K
    w_base = jax.random.uniform(k[1], (Cout, Cin, K, K), jnp.float32,
                                -1.0 / math.sqrt(fan_in), 1.0 / math.sqrt(fan_in))
    w_wav = jax.random.uniform(k[2], (Cout, Cin, K, K), jnp.float32,
                               -math.sqrt(3.0 / fan_in), math.sqrt(3.0 / fan_in))
    w_final = jax.random.uniform(k[3], (Cout, Cout, 1, 1), jnp.float32,
                                 -math.sqrt(3.0 / Cout), math.sqrt(3.0 / Cout))
    # Module init is scale=1, translation=0; perturb deterministically so the
    # per-(out_channel, in_channel) broadcasting is actually exercised.
    scale = 1.0 + 0.1 * jax.random.normal(k[4], (Cout, Cin), jnp.float32)
    trans = 0.1 * jax.random.normal(k[5], (Cout, Cin), jnp.float32)

    # tile_rows=128 forces several lane tiles per batch plus tail padding at
    # this small shape, so the multi-tile path, the halo handling across tile
    # boundaries and the two-pass BatchNorm are all exercised (the default of
    # 8192 would put each 18x18 padded image in a single tile).
    y = wavkan_layer_nd(x, w_base, w_wav, w_final, scale, trans,
                        padding=PAD, tile_rows=128)
    y = jax.block_until_ready(y)

    y_ref = _reference_forward(x, w_base, w_wav, w_final, scale, trans, PAD)
    err = float(jnp.max(jnp.abs(y - y_ref)))
    rel = float(jnp.linalg.norm(y - y_ref) / jnp.linalg.norm(y_ref))
    assert y.shape == (B, Cout, H, W), y.shape
    # bf16 input/feature/weight storage, bf16 MXU accumulation operands and the
    # bf16 inter-pass "tot" buffer give ~1e-2..3e-2 absolute deviation from the
    # f32 HIGHEST-precision reference; structural bugs would be O(1), so the
    # check still has teeth.
    assert err < 8e-2 and rel < 3e-2, (err, rel)
    print("KERNEL_OK")
</pallas_src>

<mosaic_0001>
module attributes {stable_mosaic.version = 11 : i64} {
  func.func @_wavkan_fused_kernel(%arg0: i32, %arg1: i32, %arg2: memref<1x4x512xbf16, #tpu.memory_space<vmem>>, %arg3: memref<2x512xf32, #tpu.memory_space<vmem>>, %arg4: memref<9x8x36xbf16, #tpu.memory_space<vmem>>, %arg5: memref<4x8xf32, #tpu.memory_space<vmem>>, %arg6: memref<4x8xf32, #tpu.memory_space<vmem>>, %arg7: memref<1x8x128xbf16, #tpu.memory_space<vmem>>, %arg8: memref<1x1x1x8xf32, #tpu.memory_space<vmem>>, %arg9: memref<1x1x1x8xf32, #tpu.memory_space<vmem>>, %arg10: memref<36x256xbf16, #tpu.memory_space<vmem>>, %arg11: memref<8x128xf32, #tpu.memory_space<vmem>>) attributes {dimension_semantics = [#tpu.dimension_semantics<parallel>, #tpu.dimension_semantics<parallel>], iteration_bounds = array<i64: 2, 3>, scalar_prefetch = 0 : i64, scratch_operands = 2 : i64, tpu.core_type = #tpu.core_type<tc>, window_params = [{transform_indices = @transform_0, window_bounds = array<i64: 1, 4, 512>}, {pipeline_mode = #tpu.pipeline_mode<synchronous>, transform_indices = @transform_1, window_bounds = array<i64: 2, 512>}, {pipeline_mode = #tpu.pipeline_mode<synchronous>, transform_indices = @transform_2, window_bounds = array<i64: 9, 8, 36>}, {pipeline_mode = #tpu.pipeline_mode<synchronous>, transform_indices = @transform_3, window_bounds = array<i64: 4, 8>}, {pipeline_mode = #tpu.pipeline_mode<synchronous>, transform_indices = @transform_4, window_bounds = array<i64: 4, 8>}, {transform_indices = @transform_5, window_bounds = array<i64: 1, 8, 128>}, {transform_indices = @transform_6, window_bounds = array<i64: 1, 1, 1, 8>}, {transform_indices = @transform_7, window_bounds = array<i64: 1, 1, 1, 8>}]} {
    %c128_i32 = arith.constant 128 : i32
    %0 = arith.muli %arg1, %c128_i32 : i32
    %1 = tpu.assume_multiple %0, 128 : i32
    %c0 = arith.constant 0 : index
    %c0_0 = arith.constant 0 : index
    %2 = arith.index_cast %1 : i32 to index
    %3 = vector.load %arg2[%c0, %c0_0, %2] : memref<1x4x512xbf16, #tpu.memory_space<vmem>>, vector<1x4x256xbf16>
    %4 = vector.shape_cast %3 : vector<1x4x256xbf16> to vector<4x256xbf16>
    %5 = arith.extf %4 : vector<4x256xbf16> to vector<4x256xf32>
    %c0_1 = arith.constant 0 : index
    %6 = arith.index_cast %1 : i32 to index
    %7 = vector.load %arg3[%c0_1, %6] : memref<2x512xf32, #tpu.memory_space<vmem>>, vector<1x256xf32>
    %cst = arith.constant 5.000000e-01 : f32
    %8 = vector.broadcast %cst : f32 to vector<4x256xf32>
    %9 = arith.mulf %8, %5 : vector<4x256xf32>
    %10 = math.tanh %9 : vector<4x256xf32>
    %cst_2 = arith.constant 1.000000e+00 : f32
    %11 = vector.broadcast %cst_2 : f32 to vector<4x256xf32>
    %12 = arith.addf %10, %11 : vector<4x256xf32>
    %cst_3 = arith.constant 5.000000e-01 : f32
    %13 = vector.broadcast %cst_3 : f32 to vector<4x256xf32>
    %14 = arith.mulf %13, %12 : vector<4x256xf32>
    %15 = arith.mulf %5, %14 : vector<4x256xf32>
    %16 = arith.truncf %15 : vector<4x256xf32> to vector<4x256xbf16>
    %c0_4 = arith.constant 0 : index
    %c0_5 = arith.constant 0 : index
    %17 = vector.load %arg10[%c0_4, %c0_5] : memref<36x256xbf16, #tpu.memory_space<vmem>>, vector<4x256xbf16>
    tpu.vector_store %arg10[%c0_4, %c0_5], %16 {strides = array<i32>} : memref<36x256xbf16, #tpu.memory_space<vmem>>, vector<4x256xbf16>,
    %c0_6 = arith.constant 0 : index
    %c0_7 = arith.constant 0 : index
    %18 = vector.load %arg5[%c0_6, %c0_7] : memref<4x8xf32, #tpu.memory_space<vmem>>, vector<4x1xf32>
    %19 = vector.broadcast %18 : vector<4x1xf32> to vector<4x256xf32>
    %20 = arith.subf %5, %19 : vector<4x256xf32>
    %c0_8 = arith.constant 0 : index
    %c0_9 = arith.constant 0 : index
    %21 = vector.load %arg6[%c0_8, %c0_9] : memref<4x8xf32, #tpu.memory_space<vmem>>, vector<4x1xf32>
    %22 = vector.broadcast %21 : vector<4x1xf32> to vector<4x256xf32>
    %23 = arith.mulf %20, %22 : vector<4x256xf32>
    %24 = arith.mulf %23, %23 : vector<4x256xf32>
    %cst_10 = arith.constant 1.000000e+00 : f32
    %25 = vector.broadcast %cst_10 : f32 to vector<4x256xf32>
    %26 = arith.subf %24, %25 : vector<4x256xf32>
    %cst_11 = arith.constant -5.000000e-01 : f32
    %27 = vector.broadcast %cst_11 : f32 to vector<4x256xf32>
    %28 = arith.mulf %27, %24 : vector<4x256xf32>
    %29 = math.exp %28 : vector<4x256xf32>
    %30 = arith.mulf %26, %29 : vector<4x256xf32>
    %31 = vector.broadcast %7 : vector<1x256xf32> to vector<4x256xf32>
    %32 = arith.mulf %30, %31 : vector<4x256xf32>
    %33 = arith.truncf %32 : vector<4x256xf32> to vector<4x256xbf16>
    %c4 = arith.constant 4 : index
    %c0_12 = arith.constant 0 : index
    %34 = vector.load %arg10[%c4, %c0_12] : memref<36x256xbf16, #tpu.memory_space<vmem>>, vector<4x256xbf16>
    tpu.vector_store %arg10[%c4, %c0_12], %33 {strides = array<i32>} : memref<36x256xbf16, #tpu.memory_space<vmem>>, vector<4x256xbf16>,
    %c0_13 = arith.constant 0 : index
    %c1 = arith.constant 1 : index
    %35 = vector.load %arg5[%c0_13, %c1] : memref<4x8xf32, #tpu.memory_space<vmem>>, vector<4x1xf32>
    %36 = vector.broadcast %35 : vector<4x1xf32> to vector<4x256xf32>
    %37 = arith.subf %5, %36 : vector<4x256xf32>
    %c0_14 = arith.constant 0 : index
    %c1_15 = arith.constant 1 : index
    %38 = vector.load %arg6[%c0_14, %c1_15] : memref<4x8xf32, #tpu.memory_space<vmem>>, vector<4x1xf32>
    %39 = vector.broadcast %38 : vector<4x1xf32> to vector<4x256xf32>
    %40 = arith.mulf %37, %39 : vector<4x256xf32>
    %41 = arith.mulf %40, %40 : vector<4x256xf32>
    %cst_16 = arith.constant 1.000000e+00 : f32
    %42 = vector.broadcast %cst_16 : f32 to vector<4x256xf32>
    %43 = arith.subf %41, %42 : vector<4x256xf32>
    %cst_17 = arith.constant -5.000000e-01 : f32
    %44 = vector.broadcast %cst_17 : f32 to vector<4x256xf32>
    %45 = arith.mulf %44, %41 : vector<4x256xf32>
    %46 = math.exp %45 : vector<4x256xf32>
    %47 = arith.mulf %43, %46 : vector<4x256xf32>
    %48 = vector.broadcast %7 : vector<1x256xf32> to vector<4x256xf32>
    %49 = arith.mulf %47, %48 : vector<4x256xf32>
    %50 = arith.truncf %49 : vector<4x256xf32> to vector<4x256xbf16>
    %c8 = arith.constant 8 : index
    %c0_18 = arith.constant 0 : index
    %51 = vector.load %arg10[%c8, %c0_18] : memref<36x256xbf16, #tpu.memory_space<vmem>>, vector<4x256xbf16>
    tpu.vector_store %arg10[%c8, %c0_18], %50 {strides = array<i32>} : memref<36x256xbf16, #tpu.memory_space<vmem>>, vector<4x256xbf16>,
    %c0_19 = arith.constant 0 : index
    %c2 = arith.constant 2 : index
    %52 = vector.load %arg5[%c0_19, %c2] : memref<4x8xf32, #tpu.memory_space<vmem>>, vector<4x1xf32>
    %53 = vector.broadcast %52 : vector<4x1xf32> to vector<4x256xf32>
    %54 = arith.subf %5, %53 : vector<4x256xf32>
    %c0_20 = arith.constant 0 : index
    %c2_21 = arith.constant 2 : index
    %55 = vector.load %arg6[%c0_20, %c2_21] : memref<4x8xf32, #tpu.memory_space<vmem>>, vector<4x1xf32>
    %56 = vector.broadcast %55 : vector<4x1xf32> to vector<4x256xf32>
    %57 = arith.mulf %54, %56 : vector<4x256xf32>
    %58 = arith.mulf %57, %57 : vector<4x256xf32>
    %cst_22 = arith.constant 1.000000e+00 : f32
    %59 = vector.broadcast %cst_22 : f32 to vector<4x256xf32>
    %60 = arith.subf %58, %59 : vector<4x256xf32>
    %cst_23 = arith.constant -5.000000e-01 : f32
    %61 = vector.broadcast %cst_23 : f32 to vector<4x256xf32>
    %62 = arith.mulf %61, %58 : vector<4x256xf32>
    %63 = math.exp %62 : vector<4x256xf32>
    %64 = arith.mulf %60, %63 : vector<4x256xf32>
    %65 = vector.broadcast %7 : vector<1x256xf32> to vector<4x256xf32>
    %66 = arith.mulf %64, %65 : vector<4x256xf32>
    %67 = arith.truncf %66 : vector<4x256xf32> to vector<4x256xbf16>
    %c12 = arith.constant 12 : index
    %c0_24 = arith.constant 0 : index
    %68 = vector.load %arg10[%c12, %c0_24] : memref<36x256xbf16, #tpu.memory_space<vmem>>, vector<4x256xbf16>
    tpu.vector_store %arg10[%c12, %c0_24], %67 {strides = array<i32>} : memref<36x256xbf16, #tpu.memory_space<vmem>>, vector<4x256xbf16>,
    %c0_25 = arith.constant 0 : index
    %c3 = arith.constant 3 : index
    %69 = vector.load %arg5[%c0_25, %c3] : memref<4x8xf32, #tpu.memory_space<vmem>>, vector<4x1xf32>
    %70 = vector.broadcast %69 : vector<4x1xf32> to vector<4x256xf32>
    %71 = arith.subf %5, %70 : vector<4x256xf32>
    %c0_26 = arith.constant 0 : index
    %c3_27 = arith.constant 3 : index
    %72 = vector.load %arg6[%c0_26, %c3_27] : memref<4x8xf32, #tpu.memory_space<vmem>>, vector<4x1xf32>
    %73 = vector.broadcast %72 : vector<4x1xf32> to vector<4x256xf32>
    %74 = arith.mulf %71, %73 : vector<4x256xf32>
    %75 = arith.mulf %74, %74 : vector<4x256xf32>
    %cst_28 = arith.constant 1.000000e+00 : f32
    %76 = vector.broadcast %cst_28 : f32 to vector<4x256xf32>
    %77 = arith.subf %75, %76 : vector<4x256xf32>
    %cst_29 = arith.constant -5.000000e-01 : f32
    %78 = vector.broadcast %cst_29 : f32 to vector<4x256xf32>
    %79 = arith.mulf %78, %75 : vector<4x256xf32>
    %80 = math.exp %79 : vector<4x256xf32>
    %81 = arith.mulf %77, %80 : vector<4x256xf32>
    %82 = vector.broadcast %7 : vector<1x256xf32> to vector<4x256xf32>
    %83 = arith.mulf %81, %82 : vector<4x256xf32>
    %84 = arith.truncf %83 : vector<4x256xf32> to vector<4x256xbf16>
    %c16 = arith.constant 16 : index
    %c0_30 = arith.constant 0 : index
    %85 = vector.load %arg10[%c16, %c0_30] : memref<36x256xbf16, #tpu.memory_space<vmem>>, vector<4x256xbf16>
    tpu.vector_store %arg10[%c16, %c0_30], %84 {strides = array<i32>} : memref<36x256xbf16, #tpu.memory_space<vmem>>, vector<4x256xbf16>,
    %c0_31 = arith.constant 0 : index
    %c4_32 = arith.constant 4 : index
    %86 = vector.load %arg5[%c0_31, %c4_32] : memref<4x8xf32, #tpu.memory_space<vmem>>, vector<4x1xf32>
    %87 = vector.broadcast %86 : vector<4x1xf32> to vector<4x256xf32>
    %88 = arith.subf %5, %87 : vector<4x256xf32>
    %c0_33 = arith.constant 0 : index
    %c4_34 = arith.constant 4 : index
    %89 = vector.load %arg6[%c0_33, %c4_34] : memref<4x8xf32, #tpu.memory_space<vmem>>, vector<4x1xf32>
    %90 = vector.broadcast %89 : vector<4x1xf32> to vector<4x256xf32>
    %91 = arith.mulf %88, %90 : vector<4x256xf32>
    %92 = arith.mulf %91, %91 : vector<4x256xf32>
    %cst_35 = arith.constant 1.000000e+00 : f32
    %93 = vector.broadcast %cst_35 : f32 to vector<4x256xf32>
    %94 = arith.subf %92, %93 : vector<4x256xf32>
    %cst_36 = arith.constant -5.000000e-01 : f32
    %95 = vector.broadcast %cst_36 : f32 to vector<4x256xf32>
    %96 = arith.mulf %95, %92 : vector<4x256xf32>
    %97 = math.exp %96 : vector<4x256xf32>
    %98 = arith.mulf %94, %97 : vector<4x256xf32>
    %99 = vector.broadcast %7 : vector<1x256xf32> to vector<4x256xf32>
    %100 = arith.mulf %98, %99 : vector<4x256xf32>
    %101 = arith.truncf %100 : vector<4x256xf32> to vector<4x256xbf16>
    %c20 = arith.constant 20 : index
    %c0_37 = arith.constant 0 : index
    %102 = vector.load %arg10[%c20, %c0_37] : memref<36x256xbf16, #tpu.memory_space<vmem>>, vector<4x256xbf16>
    tpu.vector_store %arg10[%c20, %c0_37], %101 {strides = array<i32>} : memref<36x256xbf16, #tpu.memory_space<vmem>>, vector<4x256xbf16>,
    %c0_38 = arith.constant 0 : index
    %c5 = arith.constant 5 : index
    %103 = vector.load %arg5[%c0_38, %c5] : memref<4x8xf32, #tpu.memory_space<vmem>>, vector<4x1xf32>
    %104 = vector.broadcast %103 : vector<4x1xf32> to vector<4x256xf32>
    %105 = arith.subf %5, %104 : vector<4x256xf32>
    %c0_39 = arith.constant 0 : index
    %c5_40 = arith.constant 5 : index
    %106 = vector.load %arg6[%c0_39, %c5_40] : memref<4x8xf32, #tpu.memory_space<vmem>>, vector<4x1xf32>
    %107 = vector.broadcast %106 : vector<4x1xf32> to vector<4x256xf32>
    %108 = arith.mulf %105, %107 : vector<4x256xf32>
    %109 = arith.mulf %108, %108 : vector<4x256xf32>
    %cst_41 = arith.constant 1.000000e+00 : f32
    %110 = vector.broadcast %cst_41 : f32 to vector<4x256xf32>
    %111 = arith.subf %109, %110 : vector<4x256xf32>
    %cst_42 = arith.constant -5.000000e-01 : f32
    %112 = vector.broadcast %cst_42 : f32 to vector<4x256xf32>
    %113 = arith.mulf %112, %109 : vector<4x256xf32>
    %114 = math.exp %113 : vector<4x256xf32>
    %115 = arith.mulf %111, %114 : vector<4x256xf32>
    %116 = vector.broadcast %7 : vector<1x256xf32> to vector<4x256xf32>
    %117 = arith.mulf %115, %116 : vector<4x256xf32>
    %118 = arith.truncf %117 : vector<4x256xf32> to vector<4x256xbf16>
    %c24 = arith.constant 24 : index
    %c0_43 = arith.constant 0 : index
    %119 = vector.load %arg10[%c24, %c0_43] : memref<36x256xbf16, #tpu.memory_space<vmem>>, vector<4x256xbf16>
    tpu.vector_store %arg10[%c24, %c0_43], %118 {strides = array<i32>} : memref<36x256xbf16, #tpu.memory_space<vmem>>, vector<4x256xbf16>,
    %c0_44 = arith.constant 0 : index
    %c6 = arith.constant 6 : index
    %120 = vector.load %arg5[%c0_44, %c6] : memref<4x8xf32, #tpu.memory_space<vmem>>, vector<4x1xf32>
    %121 = vector.broadcast %120 : vector<4x1xf32> to vector<4x256xf32>
    %122 = arith.subf %5, %121 : vector<4x256xf32>
    %c0_45 = arith.constant 0 : index
    %c6_46 = arith.constant 6 : index
    %123 = vector.load %arg6[%c0_45, %c6_46] : memref<4x8xf32, #tpu.memory_space<vmem>>, vector<4x1xf32>
    %124 = vector.broadcast %123 : vector<4x1xf32> to vector<4x256xf32>
    %125 = arith.mulf %122, %124 : vector<4x256xf32>
    %126 = arith.mulf %125, %125 : vector<4x256xf32>
    %cst_47 = arith.constant 1.000000e+00 : f32
    %127 = vector.broadcast %cst_47 : f32 to vector<4x256xf32>
    %128 = arith.subf %126, %127 : vector<4x256xf32>
    %cst_48 = arith.constant -5.000000e-01 : f32
    %129 = vector.broadcast %cst_48 : f32 to vector<4x256xf32>
    %130 = arith.mulf %129, %126 : vector<4x256xf32>
    %131 = math.exp %130 : vector<4x256xf32>
    %132 = arith.mulf %128, %131 : vector<4x256xf32>
    %133 = vector.broadcast %7 : vector<1x256xf32> to vector<4x256xf32>
    %134 = arith.mulf %132, %133 : vector<4x256xf32>
    %135 = arith.truncf %134 : vector<4x256xf32> to vector<4x256xbf16>
    %c28 = arith.constant 28 : index
    %c0_49 = arith.constant 0 : index
    %136 = vector.load %arg10[%c28, %c0_49] : memref<36x256xbf16, #tpu.memory_space<vmem>>, vector<4x256xbf16>
    tpu.vector_store %arg10[%c28, %c0_49], %135 {strides = array<i32>} : memref<36x256xbf16, #tpu.memory_space<vmem>>, vector<4x256xbf16>,
    %c0_50 = arith.constant 0 : index
    %c7 = arith.constant 7 : index
    %137 = vector.load %arg5[%c0_50, %c7] : memref<4x8xf32, #tpu.memory_space<vmem>>, vector<4x1xf32>
    %138 = vector.broadcast %137 : vector<4x1xf32> to vector<4x256xf32>
    %139 = arith.subf %5, %138 : vector<4x256xf32>
    %c0_51 = arith.constant 0 : index
    %c7_52 = arith.constant 7 : index
    %140 = vector.load %arg6[%c0_51, %c7_52] : memref<4x8xf32, #tpu.memory_space<vmem>>, vector<4x1xf32>
    %141 = vector.broadcast %140 : vector<4x1xf32> to vector<4x256xf32>
    %142 = arith.mulf %139, %141 : vector<4x256xf32>
    %143 = arith.mulf %142, %142 : vector<4x256xf32>
    %cst_53 = arith.constant 1.000000e+00 : f32
    %144 = vector.broadcast %cst_53 : f32 to vector<4x256xf32>
    %145 = arith.subf %143, %144 : vector<4x256xf32>
    %cst_54 = arith.constant -5.000000e-01 : f32
    %146 = vector.broadcast %cst_54 : f32 to vector<4x256xf32>
    %147 = arith.mulf %146, %143 : vector<4x256xf32>
    %148 = math.exp %147 : vector<4x256xf32>
    %149 = arith.mulf %145, %148 : vector<4x256xf32>
    %150 = vector.broadcast %7 : vector<1x256xf32> to vector<4x256xf32>
    %151 = arith.mulf %149, %150 : vector<4x256xf32>
    %152 = arith.truncf %151 : vector<4x256xf32> to vector<4x256xbf16>
    %c32 = arith.constant 32 : index
    %c0_55 = arith.constant 0 : index
    %153 = vector.load %arg10[%c32, %c0_55] : memref<36x256xbf16, #tpu.memory_space<vmem>>, vector<4x256xbf16>
    tpu.vector_store %arg10[%c32, %c0_55], %152 {strides = array<i32>} : memref<36x256xbf16, #tpu.memory_space<vmem>>, vector<4x256xbf16>,
    %c0_56 = arith.constant 0 : index
    %c0_57 = arith.constant 0 : index
    %c0_58 = arith.constant 0 : index
    %154 = vector.load %arg4[%c0_56, %c0_57, %c0_58] : memref<9x8x36xbf16, #tpu.memory_space<vmem>>, vector<1x8x36xbf16>
    %155 = vector.shape_cast %154 : vector<1x8x36xbf16> to vector<8x36xbf16>
    %c0_59 = arith.constant 0 : index
    %c0_60 = arith.constant 0 : index
    %156 = vector.load %arg10[%c0_59, %c0_60] : memref<36x256xbf16, #tpu.memory_space<vmem>>, vector<36x128xbf16>
    %cst_61 = arith.constant dense<0.000000e+00> : vector<8x128xf32>
    %157 = tpu.matmul %155, %156, %cst_61 {dimension_numbers = #tpu.dot_dimension_numbers<[1], [0], [0], [1], [0, 0, 1, 1], [], []>} : vector<8x36xbf16>, vector<36x128xbf16>, vector<8x128xf32> -> vector<8x128xf32>
    %c0_62 = arith.constant 0 : index
    %c0_63 = arith.constant 0 : index
    %158 = vector.load %arg11[%c0_62, %c0_63] : memref<8x128xf32, #tpu.memory_space<vmem>>, vector<8x128xf32>
    tpu.vector_store %arg11[%c0_62, %c0_63], %157 {strides = array<i32>} : memref<8x128xf32, #tpu.memory_space<vmem>>, vector<8x128xf32>,
    %c1_64 = arith.constant 1 : index
    %c0_65 = arith.constant 0 : index
    %c0_66 = arith.constant 0 : index
    %159 = vector.load %arg4[%c1_64, %c0_65, %c0_66] : memref<9x8x36xbf16, #tpu.memory_space<vmem>>, vector<1x8x36xbf16>
    %160 = vector.shape_cast %159 : vector<1x8x36xbf16> to vector<8x36xbf16>
    %c0_67 = arith.constant 0 : index
    %c1_68 = arith.constant 1 : index
    %161 = vector.load %arg10[%c0_67, %c1_68] : memref<36x256xbf16, #tpu.memory_space<vmem>>, vector<36x128xbf16>
    %cst_69 = arith.constant dense<0.000000e+00> : vector<8x128xf32>
    %162 = tpu.matmul %160, %161, %cst_69 {dimension_numbers = #tpu.dot_dimension_numbers<[1], [0], [0], [1], [0, 0, 1, 1], [], []>} : vector<8x36xbf16>, vector<36x128xbf16>, vector<8x128xf32> -> vector<8x128xf32>
    %c0_70 = arith.constant 0 : index
    %c0_71 = arith.constant 0 : index
    %163 = vector.load %arg11[%c0_70, %c0_71] : memref<8x128xf32, #tpu.memory_space<vmem>>, vector<8x128xf32>
    %164 = arith.addf %163, %162 : vector<8x128xf32>
    %c0_72 = arith.constant 0 : index
    %c0_73 = arith.constant 0 : index
    %165 = vector.load %arg11[%c0_72, %c0_73] : memref<8x128xf32, #tpu.memory_space<vmem>>, vector<8x128xf32>
    tpu.vector_store %arg11[%c0_72, %c0_73], %164 {strides = array<i32>} : memref<8x128xf32, #tpu.memory_space<vmem>>, vector<8x128xf32>,
    %c2_74 = arith.constant 2 : index
    %c0_75 = arith.constant 0 : index
    %c0_76 = arith.constant 0 : index
    %166 = vector.load %arg4[%c2_74, %c0_75, %c0_76] : memref<9x8x36xbf16, #tpu.memory_space<vmem>>, vector<1x8x36xbf16>
    %167 = vector.shape_cast %166 : vector<1x8x36xbf16> to vector<8x36xbf16>
    %c0_77 = arith.constant 0 : index
    %c2_78 = arith.constant 2 : index
    %168 = vector.load %arg10[%c0_77, %c2_78] : memref<36x256xbf16, #tpu.memory_space<vmem>>, vector<36x128xbf16>
    %cst_79 = arith.constant dense<0.000000e+00> : vector<8x128xf32>
    %169 = tpu.matmul %167, %168, %cst_79 {dimension_numbers = #tpu.dot_dimension_numbers<[1], [0], [0], [1], [0, 0, 1, 1], [], []>} : vector<8x36xbf16>, vector<36x128xbf16>, vector<8x128xf32> -> vector<8x128xf32>
    %c0_80 = arith.constant 0 : index
    %c0_81 = arith.constant 0 : index
    %170 = vector.load %arg11[%c0_80, %c0_81] : memref<8x128xf32, #tpu.memory_space<vmem>>, vector<8x128xf32>
    %171 = arith.addf %170, %169 : vector<8x128xf32>
    %c0_82 = arith.constant 0 : index
    %c0_83 = arith.constant 0 : index
    %172 = vector.load %arg11[%c0_82, %c0_83] : memref<8x128xf32, #tpu.memory_space<vmem>>, vector<8x128xf32>
    tpu.vector_store %arg11[%c0_82, %c0_83], %171 {strides = array<i32>} : memref<8x128xf32, #tpu.memory_space<vmem>>, vector<8x128xf32>,
    %c3_84 = arith.constant 3 : index
    %c0_85 = arith.constant 0 : index
    %c0_86 = arith.constant 0 : index
    %173 = vector.load %arg4[%c3_84, %c0_85, %c0_86] : memref<9x8x36xbf16, #tpu.memory_space<vmem>>, vector<1x8x36xbf16>
    %174 = vector.shape_cast %173 : vector<1x8x36xbf16> to vector<8x36xbf16>
    %c0_87 = arith.constant 0 : index
    %c18 = arith.constant 18 : index
    %175 = vector.load %arg10[%c0_87, %c18] : memref<36x256xbf16, #tpu.memory_space<vmem>>, vector<36x128xbf16>
    %cst_88 = arith.constant dense<0.000000e+00> : vector<8x128xf32>
    %176 = tpu.matmul %174, %175, %cst_88 {dimension_numbers = #tpu.dot_dimension_numbers<[1], [0], [0], [1], [0, 0, 1, 1], [], []>} : vector<8x36xbf16>, vector<36x128xbf16>, vector<8x128xf32> -> vector<8x128xf32>
    %c0_89 = arith.constant 0 : index
    %c0_90 = arith.constant 0 : index
    %177 = vector.load %arg11[%c0_89, %c0_90] : memref<8x128xf32, #tpu.memory_space<vmem>>, vector<8x128xf32>
    %178 = arith.addf %177, %176 : vector<8x128xf32>
    %c0_91 = arith.constant 0 : index
    %c0_92 = arith.constant 0 : index
    %179 = vector.load %arg11[%c0_91, %c0_92] : memref<8x128xf32, #tpu.memory_space<vmem>>, vector<8x128xf32>
    tpu.vector_store %arg11[%c0_91, %c0_92], %178 {strides = array<i32>} : memref<8x128xf32, #tpu.memory_space<vmem>>, vector<8x128xf32>,
    %c4_93 = arith.constant 4 : index
    %c0_94 = arith.constant 0 : index
    %c0_95 = arith.constant 0 : index
    %180 = vector.load %arg4[%c4_93, %c0_94, %c0_95] : memref<9x8x36xbf16, #tpu.memory_space<vmem>>, vector<1x8x36xbf16>
    %181 = vector.shape_cast %180 : vector<1x8x36xbf16> to vector<8x36xbf16>
    %c0_96 = arith.constant 0 : index
    %c19 = arith.constant 19 : index
    %182 = vector.load %arg10[%c0_96, %c19] : memref<36x256xbf16, #tpu.memory_space<vmem>>, vector<36x128xbf16>
    %cst_97 = arith.constant dense<0.000000e+00> : vector<8x128xf32>
    %183 = tpu.matmul %181, %182, %cst_97 {dimension_numbers = #tpu.dot_dimension_numbers<[1], [0], [0], [1], [0, 0, 1, 1], [], []>} : vector<8x36xbf16>, vector<36x128xbf16>, vector<8x128xf32> -> vector<8x128xf32>
    %c0_98 = arith.constant 0 : index
    %c0_99 = arith.constant 0 : index
    %184 = vector.load %arg11[%c0_98, %c0_99] : memref<8x128xf32, #tpu.memory_space<vmem>>, vector<8x128xf32>
    %185 = arith.addf %184, %183 : vector<8x128xf32>
    %c0_100 = arith.constant 0 : index
    %c0_101 = arith.constant 0 : index
    %186 = vector.load %arg11[%c0_100, %c0_101] : memref<8x128xf32, #tpu.memory_space<vmem>>, vector<8x128xf32>
    tpu.vector_store %arg11[%c0_100, %c0_101], %185 {strides = array<i32>} : memref<8x128xf32, #tpu.memory_space<vmem>>, vector<8x128xf32>,
    %c5_102 = arith.constant 5 : index
    %c0_103 = arith.constant 0 : index
    %c0_104 = arith.constant 0 : index
    %187 = vector.load %arg4[%c5_102, %c0_103, %c0_104] : memref<9x8x36xbf16, #tpu.memory_space<vmem>>, vector<1x8x36xbf16>
    %188 = vector.shape_cast %187 : vector<1x8x36xbf16> to vector<8x36xbf16>
    %c0_105 = arith.constant 0 : index
    %c20_106 = arith.constant 20 : index
    %189 = vector.load %arg10[%c0_105, %c20_106] : memref<36x256xbf16, #tpu.memory_space<vmem>>, vector<36x128xbf16>
    %cst_107 = arith.constant dense<0.000000e+00> : vector<8x128xf32>
    %190 = tpu.matmul %188, %189, %cst_107 {dimension_numbers = #tpu.dot_dimension_numbers<[1], [0], [0], [1], [0, 0, 1, 1], [], []>} : vector<8x36xbf16>, vector<36x128xbf16>, vector<8x128xf32> -> vector<8x128xf32>
    %c0_108 = arith.constant 0 : index
    %c0_109 = arith.constant 0 : index
    %191 = vector.load %arg11[%c0_108, %c0_109] : memref<8x128xf32, #tpu.memory_space<vmem>>, vector<8x128xf32>
    %192 = arith.addf %191, %190 : vector<8x128xf32>
    %c0_110 = arith.constant 0 : index
    %c0_111 = arith.constant 0 : index
    %193 = vector.load %arg11[%c0_110, %c0_111] : memref<8x128xf32, #tpu.memory_space<vmem>>, vector<8x128xf32>
    tpu.vector_store %arg11[%c0_110, %c0_111], %192 {strides = array<i32>} : memref<8x128xf32, #tpu.memory_space<vmem>>, vector<8x128xf32>,
    %c6_112 = arith.constant 6 : index
    %c0_113 = arith.constant 0 : index
    %c0_114 = arith.constant 0 : index
    %194 = vector.load %arg4[%c6_112, %c0_113, %c0_114] : memref<9x8x36xbf16, #tpu.memory_space<vmem>>, vector<1x8x36xbf16>
    %195 = vector.shape_cast %194 : vector<1x8x36xbf16> to vector<8x36xbf16>
    %c0_115 = arith.constant 0 : index
    %c36 = arith.constant 36 : index
    %196 = vector.load %arg10[%c0_115, %c36] : memref<36x256xbf16, #tpu.memory_space<vmem>>, vector<36x128xbf16>
    %cst_116 = arith.constant dense<0.000000e+00> : vector<8x128xf32>
    %197 = tpu.matmul %195, %196, %cst_116 {dimension_numbers = #tpu.dot_dimension_numbers<[1], [0], [0], [1], [0, 0, 1, 1], [], []>} : vector<8x36xbf16>, vector<36x128xbf16>, vector<8x128xf32> -> vector<8x128xf32>
    %c0_117 = arith.constant 0 : index
    %c0_118 = arith.constant 0 : index
    %198 = vector.load %arg11[%c0_117, %c0_118] : memref<8x128xf32, #tpu.memory_space<vmem>>, vector<8x128xf32>
    %199 = arith.addf %198, %197 : vector<8x128xf32>
    %c0_119 = arith.constant 0 : index
    %c0_120 = arith.constant 0 : index
    %200 = vector.load %arg11[%c0_119, %c0_120] : memref<8x128xf32, #tpu.memory_space<vmem>>, vector<8x128xf32>
    tpu.vector_store %arg11[%c0_119, %c0_120], %199 {strides = array<i32>} : memref<8x128xf32, #tpu.memory_space<vmem>>, vector<8x128xf32>,
    %c7_121 = arith.constant 7 : index
    %c0_122 = arith.constant 0 : index
    %c0_123 = arith.constant 0 : index
    %201 = vector.load %arg4[%c7_121, %c0_122, %c0_123] : memref<9x8x36xbf16, #tpu.memory_space<vmem>>, vector<1x8x36xbf16>
    %202 = vector.shape_cast %201 : vector<1x8x36xbf16> to vector<8x36xbf16>
    %c0_124 = arith.constant 0 : index
    %c37 = arith.constant 37 : index
    %203 = vector.load %arg10[%c0_124, %c37] : memref<36x256xbf16, #tpu.memory_space<vmem>>, vector<36x128xbf16>
    %cst_125 = arith.constant dense<0.000000e+00> : vector<8x128xf32>
    %204 = tpu.matmul %202, %203, %cst_125 {dimension_numbers = #tpu.dot_dimension_numbers<[1], [0], [0], [1], [0, 0, 1, 1], [], []>} : vector<8x36xbf16>, vector<36x128xbf16>, vector<8x128xf32> -> vector<8x128xf32>
    %c0_126 = arith.constant 0 : index
    %c0_127 = arith.constant 0 : index
    %205 = vector.load %arg11[%c0_126, %c0_127] : memref<8x128xf32, #tpu.memory_space<vmem>>, vector<8x128xf32>
    %206 = arith.addf %205, %204 : vector<8x128xf32>
    %c0_128 = arith.constant 0 : index
    %c0_129 = arith.constant 0 : index
    %207 = vector.load %arg11[%c0_128, %c0_129] : memref<8x128xf32, #tpu.memory_space<vmem>>, vector<8x128xf32>
    tpu.vector_store %arg11[%c0_128, %c0_129], %206 {strides = array<i32>} : memref<8x128xf32, #tpu.memory_space<vmem>>, vector<8x128xf32>,
    %c8_130 = arith.constant 8 : index
    %c0_131 = arith.constant 0 : index
    %c0_132 = arith.constant 0 : index
    %208 = vector.load %arg4[%c8_130, %c0_131, %c0_132] : memref<9x8x36xbf16, #tpu.memory_space<vmem>>, vector<1x8x36xbf16>
    %209 = vector.shape_cast %208 : vector<1x8x36xbf16> to vector<8x36xbf16>
    %c0_133 = arith.constant 0 : index
    %c38 = arith.constant 38 : index
    %210 = vector.load %arg10[%c0_133, %c38] : memref<36x256xbf16, #tpu.memory_space<vmem>>, vector<36x128xbf16>
    %cst_134 = arith.constant dense<0.000000e+00> : vector<8x128xf32>
    %211 = tpu.matmul %209, %210, %cst_134 {dimension_numbers = #tpu.dot_dimension_numbers<[1], [0], [0], [1], [0, 0, 1, 1], [], []>} : vector<8x36xbf16>, vector<36x128xbf16>, vector<8x128xf32> -> vector<8x128xf32>
    %c0_135 = arith.constant 0 : index
    %c0_136 = arith.constant 0 : index
    %212 = vector.load %arg11[%c0_135, %c0_136] : memref<8x128xf32, #tpu.memory_space<vmem>>, vector<8x128xf32>
    %213 = arith.addf %212, %211 : vector<8x128xf32>
    %c0_137 = arith.constant 0 : index
    %c0_138 = arith.constant 0 : index
    %214 = vector.load %arg11[%c0_137, %c0_138] : memref<8x128xf32, #tpu.memory_space<vmem>>, vector<8x128xf32>
    tpu.vector_store %arg11[%c0_137, %c0_138], %213 {strides = array<i32>} : memref<8x128xf32, #tpu.memory_space<vmem>>, vector<8x128xf32>,
    %c0_139 = arith.constant 0 : index
    %c0_140 = arith.constant 0 : index
    %215 = vector.load %arg11[%c0_139, %c0_140] : memref<8x128xf32, #tpu.memory_space<vmem>>, vector<8x128xf32>
    %216 = vector.shape_cast %215 : vector<8x128xf32> to vector<1x8x128xf32>
    %217 = arith.truncf %216 : vector<1x8x128xf32> to vector<1x8x128xbf16>
    %c0_141 = arith.constant 0 : index
    %c0_142 = arith.constant 0 : index
    %c0_143 = arith.constant 0 : index
    %218 = vector.load %arg7[%c0_141, %c0_142, %c0_143] : memref<1x8x128xbf16, #tpu.memory_space<vmem>>, vector<1x8x128xbf16>
    tpu.vector_store %arg7[%c0_141, %c0_142, %c0_143], %217 {strides = array<i32>} : memref<1x8x128xbf16, #tpu.memory_space<vmem>>, vector<1x8x128xbf16>,
    %c1_144 = arith.constant 1 : index
    %219 = arith.index_cast %1 : i32 to index
    %220 = vector.load %arg3[%c1_144, %219] : memref<2x512xf32, #tpu.memory_space<vmem>>, vector<1x128xf32>
    %221 = vector.broadcast %220 : vector<1x128xf32> to vector<8x128xf32>
    %222 = arith.mulf %215, %221 : vector<8x128xf32>
    %cst_145 = arith.constant dense<0.000000e+00> : vector<8xf32>
    %223 = vector.multi_reduction <add>, %222, %cst_145 [1] : vector<8x128xf32> to vector<8xf32>
    %224 = vector.shape_cast %223 : vector<8xf32> to vector<1x1x1x8xf32>
    %c0_146 = arith.constant 0 : index
    %c0_147 = arith.constant 0 : index
    %c0_148 = arith.constant 0 : index
    %c0_149 = arith.constant 0 : index
    %225 = vector.load %arg8[%c0_146, %c0_147, %c0_148, %c0_149] : memref<1x1x1x8xf32, #tpu.memory_space<vmem>>, vector<1x1x1x8xf32>
    tpu.vector_store %arg8[%c0_146, %c0_147, %c0_148, %c0_149], %224 {strides = array<i32>} : memref<1x1x1x8xf32, #tpu.memory_space<vmem>>, vector<1x1x1x8xf32>,
    %226 = arith.mulf %222, %215 : vector<8x128xf32>
    %cst_150 = arith.constant dense<0.000000e+00> : vector<8xf32>
    %227 = vector.multi_reduction <add>, %226, %cst_150 [1] : vector<8x128xf32> to vector<8xf32>
    %228 = vector.shape_cast %227 : vector<8xf32> to vector<1x1x1x8xf32>
    %c0_151 = arith.constant 0 : index
    %c0_152 = arith.constant 0 : index
    %c0_153 = arith.constant 0 : index
    %c0_154 = arith.constant 0 : index
    %229 = vector.load %arg9[%c0_151, %c0_152, %c0_153, %c0_154] : memref<1x1x1x8xf32, #tpu.memory_space<vmem>>, vector<1x1x1x8xf32>
    tpu.vector_store %arg9[%c0_151, %c0_152, %c0_153, %c0_154], %228 {strides = array<i32>} : memref<1x1x1x8xf32, #tpu.memory_space<vmem>>, vector<1x1x1x8xf32>,
    return
  }
  func.func @transform_0(%arg0: i32, %arg1: i32) -> (i32, i32, i32) {
    %c0_i32 = arith.constant 0 : i32
    %c0_i32_0 = arith.constant 0 : i32
    %c0_i32_1 = arith.constant 0 : i32
    return %arg0, %c0_i32, %c0_i32_0 : i32, i32, i32
  }
  func.func @transform_1(%arg0: i32, %arg1: i32) -> (i32, i32) {
    %c0_i32 = arith.constant 0 : i32
    %c0_i32_0 = arith.constant 0 : i32
    %c0_i32_1 = arith.constant 0 : i32
    return %c0_i32, %c0_i32_0 : i32, i32
  }
  func.func @transform_2(%arg0: i32, %arg1: i32) -> (i32, i32, i32) {
    %c0_i32 = arith.constant 0 : i32
    %c0_i32_0 = arith.constant 0 : i32
    %c0_i32_1 = arith.constant 0 : i32
    %c0_i32_2 = arith.constant 0 : i32
    return %c0_i32, %c0_i32_0, %c0_i32_1 : i32, i32, i32
  }
  func.func @transform_3(%arg0: i32, %arg1: i32) -> (i32, i32) {
    %c0_i32 = arith.constant 0 : i32
    %c0_i32_0 = arith.constant 0 : i32
    %c0_i32_1 = arith.constant 0 : i32
    return %c0_i32, %c0_i32_0 : i32, i32
  }
  func.func @transform_4(%arg0: i32, %arg1: i32) -> (i32, i32) {
    %c0_i32 = arith.constant 0 : i32
    %c0_i32_0 = arith.constant 0 : i32
    %c0_i32_1 = arith.constant 0 : i32
    return %c0_i32, %c0_i32_0 : i32, i32
  }
  func.func @transform_5(%arg0: i32, %arg1: i32) -> (i32, i32, i32) {
    %c0_i32 = arith.constant 0 : i32
    %c0_i32_0 = arith.constant 0 : i32
    return %arg0, %c0_i32, %arg1 : i32, i32, i32
  }
  func.func @transform_6(%arg0: i32, %arg1: i32) -> (i32, i32, i32, i32) {
    %c0_i32 = arith.constant 0 : i32
    %c0_i32_0 = arith.constant 0 : i32
    %c0_i32_1 = arith.constant 0 : i32
    return %arg0, %arg1, %c0_i32, %c0_i32_0 : i32, i32, i32, i32
  }
  func.func @transform_7(%arg0: i32, %arg1: i32) -> (i32, i32, i32, i32) {
    %c0_i32 = arith.constant 0 : i32
    %c0_i32_0 = arith.constant 0 : i32
    %c0_i32_1 = arith.constant 0 : i32
    return %arg0, %arg1, %c0_i32, %c0_i32_0 : i32, i32, i32, i32
  }
}

</mosaic_0001>

<bundles_post_ra>
// kernel: tpu_custom_call.1
= control target key start
LH: loop header
LB: loop body
LE: loop exit
PB: predicated region body
PF: predicated region fallthrough
CT: control target
= control target key end

     0   :  { %s3297_s0 = inlined_call_operand.hbm [shape: bf16[2,4,512], index: 0, kind: input, shape index: {}]   ;;  %s3298_s1 = inlined_call_operand.hbm [shape: f32[2,512], index: 1, kind: input, shape index: {}]   ;;  %s3299_s2 = inlined_call_operand.hbm [shape: bf16[9,8,36], index: 2, kind: input, shape index: {}]   ;;  %s3300_s3 = inlined_call_operand.vmem [shape: f32[4,8], index: 3, kind: input, shape index: {}]   ;;  %s3301_s4 = inlined_call_operand.vmem [shape: f32[4,8], index: 4, kind: input, shape index: {}]   ;;  %s3302_s5 = inlined_call_operand.hbm [shape: bf16[2,8,384], index: 5, kind: output, shape index: {0}]   ;;  %s3303_s6 = inlined_call_operand.hbm [shape: f32[2,3,1,8], index: 6, kind: output, shape index: {1}]   ;;  %s3304_s7 = inlined_call_operand.hbm [shape: f32[2,3,1,8], index: 7, kind: output, shape index: {2}]  }
   0x1   :  { %3320 = sst [smem:[#allocation23_spill]] %s3298_s1 }
   0x2   :  { %3321 = sst [smem:[#allocation24_spill]] %s3299_s2 }
   0x3   :  { %3322 = sst [smem:[#allocation25_spill]] %s3302_s5 }
   0x4   :  { %3323 = sst [smem:[#allocation26_spill]] %s3303_s6 }
   0x5   :  { %3324 = sst [smem:[#allocation27_spill]] %s3304_s7 }
   0x6   :  { %13 = vsyncpa [#allocation5], 0 }
   0x7   :  { %15 = vsyncpa [#allocation5 + $0x1], 0 }
   0x8   :  { %16 = vsyncpa [#allocation8], 0 }
   0x9   :  { %17 = vsyncpa [#allocation6], 0 }
   0xa   :  { %19 = vsyncpa [#allocation6 + $0x1], 0 }
   0xb   :  { %20 = vsyncpa [#allocation12], 0 }
   0xc   :  { %22 = vsyncpa [#allocation12 + $0x1], 0  ;;  %s2676_s24 = smov 0   ;;  %s2678_s25 = smov 0  }
   0xd   :  { %s2680_s26 = smov 0   ;;  %s2682_s27 = smov 0  }
   0xe   :  { %s2684_s28 = smov 0   ;;  %s2686_s29 = smov 0  }
   0xf   :  { %s2688_s30 = smov 0   ;;  %s2690_s8 = smov 0  }
  0x10   :  { %s2692_s9 = smov 0   ;;  %s2694_s10 = smov 0  }
  0x11   :  { %s2696_s11 = smov 0  }
  0x12 LB: > { %3325 = sst [smem:[#allocation18_spill]] %s2567_s24  ;;  %s2730_s12 = sadd.s32 4294967295, %s2607_s11   ;;  %s2607_s11 = sphi %s2696_s11, %s28_s11   ;;  %s2603_s10 = sphi %s2694_s10, %s3365_s10   ;;  %s2599_s9 = sphi %s2692_s9, %s3364_s9   ;;  %s2595_s8 = sphi %s2690_s8, %s3363_s8   ;;  %s2591_s30 = sphi %s2688_s30, %s3354_s30   ;;  %s2587_s29 = sphi %s2686_s29, %s3362_s29   ;;  %s2583_s28 = sphi %s2684_s28, %s3361_s28   ;;  %s2579_s27 = sphi %s2682_s27, %s3360_s27   ;;  %s2575_s26 = sphi %s2680_s26, %s3359_s26   ;;  %s2571_s25 = sphi %s2678_s25, %s3358_s25   ;;  %s2567_s24 = sphi %s2676_s24, %s3357_s24  }
  0x13   : > { %3326 = sst [smem:[#allocation19_spill]] %s2599_s9  ;;  %s3305_s13 = sadd.s32 4294967294, %s2607_s11  }
  0x14   : > { %p60_p0 = scmp.ne.s32.totalorder %s2583_s28, %s2579_s27  ;;  %p3309_p1 = scmp.eq.s32.totalorder %s2730_s12, 0 }
  0x15   : > { %p169_p2 = scmp.ne.s32.totalorder %s2575_s26, %s2571_s25  ;;  %p170_p4 = scmp.eq.s32.totalorder %s2730_s12, 5 }
  0x16   : > { %p2740_p3 = por %p3309_p1, %p60_p0  ;;  %p175_p5 = scmp.ne.s32.totalorder %s2571_s25, %s2567_s24 }
  0x17   : > { %p176_p6 = scmp.eq.s32.totalorder %s3305_s13, 5  ;;  %p2749_p7 = por %p170_p4, %p169_p2 }
  0x18   : > { %s3327_s15 = scalar_select %p2740_p3, 1, 0 }
  0x19   : > { %s3328_s16 = scalar_select %p2749_p7, 1, 0 }
  0x1a   : > { %p1855_p8 = scmp.ge.s32.totalorder %s2607_s11, 1  ;;  %p2754_p9 = por %p176_p6, %p175_p5 }
  0x1b   : > { %3329 = sst [smem:[#allocation20_spill]] %s3328_s16  ;;  %p239_p10 = scmp.lt.s32.totalorder %s2607_s11, 7 }
  0x1c   : > { %s3330_s17 = scalar_select %p2754_p9, 1, 0 }
  0x1d   : > { %p2759_p11 = pnand %p1855_p8, %p239_p10  ;;  %s2609_s19 = smov [#allocation7]  }
  0x1e   : > { %3331 = sst [smem:[#allocation21_spill]] %s3330_s17  ;;  %s252_s20 = sshll.u32 %s2609_s19, 4  ;;  %s253_s20 = int_to_ptr.vmem [resolvable:$true] %s252_s20 }
  0x1f   : > { %s3332_s18 = scalar_select %p2759_p11, 1, 0 }
  0x20   : > { %p2138_p12 = pneg %p2759_p11  ;;  %s2610_s21 = smov [#allocation9]  }
  0x21   : > { %s262_s22 = sshll.u32 %s2610_s21, 4  ;;  %s3334_s1 = sld [smem:[#allocation23_spill]]  ;;  %s2771_s22 = int_to_ptr.vmem [resolvable:$true] %s262_s22 }
  0x22   : > { %p2767_p13 = pnand %p2138_p12, %p3309_p1 }
  0x24   : > { %p2337_p2 = pneg %p2767_p13 }
  0x27   : > { %s2335_s14 = scalar_lea.hbm %s3334_s1, 128 }
  0x28   : > { %p2336_p0 = scmp.ne.s32.totalorder %s3334_s1, %s2335_s14  ;;  %p2342_p6 = scmp.lt.u32.totalorder %s2335_s14, %s3334_s1 }
  0x2a   : > { %p2338_p4 = pnand %p2337_p2, %p2336_p0 }
  0x2c   : > { %p2339_p5 = pneg %p2338_p4 }
  0x2e   : > { %p2344_p8 = pnand %p2342_p6, %p2339_p5 }
  0x30   : > { %2347 = shalt.err (!%p2344_p8)
}
  0x31   : > { %s2348_s7 = scalar_lea.vmem %s253_s20, 128  ;;  %p2356_p9 = scmp.lt.s32.totalorder %s253_s20, %s253_s20 }
  0x32   : > { %p2349_p10 = scmp.ne.s32.totalorder %s253_s20, %s2348_s7  ;;  %p2357_p7 = scmp.lt.s32.totalorder %s2348_s7, %s2348_s7 }
  0x34   : > { %p2351_p12 = pnand %p2349_p10, %p2337_p2  ;;  %p2358_p3 = por %p2357_p7, %p2356_p9 }
  0x36   : > { %p2352_p1 = pneg %p2351_p12 }
  0x38   : > { %p2359_p11 = pnand %p2358_p3, %p2352_p1 }
  0x3a   : > { %2362 = shalt.err (!%p2359_p11)
}
  0x3b   : > { %2141 = dma.hbm_to_vmem [thread:$0]  (!%p2767_p13), %s3334_s1, 128, %s253_s20, [#allocation8]  }
  0x3c   : > { %s3335_s2 = sld [smem:[#allocation24_spill]] }
  0x42   : > { %s2363_s27 = scalar_lea.hbm %s3335_s2, 576 }
  0x43   : > { %p2364_p0 = scmp.ne.s32.totalorder %s3335_s2, %s2363_s27  ;;  %p2370_p3 = scmp.lt.u32.totalorder %s2363_s27, %s3335_s2 }
  0x45   : > { %p2366_p7 = pnand %p2364_p0, %p2337_p2 }
  0x47   : > { %p2367_p1 = pneg %p2366_p7 }
  0x49   : > { %p2372_p9 = pnand %p2370_p3, %p2367_p1 }
  0x4b   : > { %2375 = shalt.err (!%p2372_p9)
}
  0x4c   : > { %s2376_s20 = scalar_lea.vmem %s2771_s22, 576  ;;  %p2384_p6 = scmp.lt.s32.totalorder %s2771_s22, %s2771_s22 }
  0x4d   : > { %p2377_p11 = scmp.ne.s32.totalorder %s2771_s22, %s2376_s20  ;;  %p2385_p8 = scmp.lt.s32.totalorder %s2376_s20, %s2376_s20 }
  0x4f   : > { %p2379_p4 = pnand %p2377_p11, %p2337_p2  ;;  %p2386_p10 = por %p2385_p8, %p2384_p6 }
  0x51   : > { %p2380_p5 = pneg %p2379_p4 }
  0x53   : > { %p2387_p12 = pnand %p2386_p10, %p2380_p5 }
  0x55   : > { %2390 = shalt.err (!%p2387_p12)
}
  0x56   : > { %s2611_s6 = smov 64   ;;  %s2612_s13 = smov 4  }
  0x57   : > { %2144 = dma.hbm_to_vmem [thread:$0]  (!%p2767_p13), %s3335_s2, 576, %s2771_s22, [#allocation8], %s2611_s6, %s2611_s6, %s2612_s13  }
  0x58   : > { %s37_s14 = sadd.s32 1, %s2599_s9  ;;  %s40_s27 = sadd.s32 1, %s2603_s10 }
  0x59   : > { %p38_p2 = scmp.ge.s32.totalorder %s37_s14, 3  ;;  %s47_s19 = sadd.s32 1, %s2587_s29 }
  0x5a   : > { %p54_p0 = scmp.ne.s32.totalorder %s2587_s29, %s2583_s28  ;;  %p55_p7 = scmp.eq.s32.totalorder %s2607_s11, 0 }
  0x5b   : > { %s3367_s14 = smov (%p38_p2, %s37_s14), 0  ;;  %s3369_s27 = smov (!%p38_p2, %s40_s27), %s2603_s10 }
  0x5c   : > { %3336 = sst [smem:[#allocation22_spill]] %s3367_s14  ;;  %p2829_p1 = por %p55_p7, %p54_p0 }
  0x5d   : > { %s155_s21 = ssub.s32 %s2599_s9, %s3367_s14  ;;  %p42_p13 = scmp.ge.s32.totalorder %s3369_s27, 2 }
  0x5e   : > { %p2161_p3 = scmp.lt.s32.totalorder %s2607_s11, 6  ;;  %s282_s22 = sand.u32 1, %s2587_s29  }
  0x5f   : > { %s1954_s7 = sshll.u32 %s2603_s10, 7  ;;  %s3371_s27 = smov (%p42_p13, %s3369_s27), 0 }
  0x60   : > { %s1859_s20 = sshll.u32 %s282_s22, 3  ;;  %s44_s6 = ssub.s32 %s2603_s10, %s3371_s27 }
  0x61   : > { %p45_p9 = scmp.eq.s32.totalorder %s44_s6, 0  ;;  %s156_s13 = sor.u32 %s155_s21, %s44_s6 }
  0x62   : > { %p157_p11 = scmp.eq.s32.totalorder %s156_s13, 0  ;;  %s2845_s1 = scalar_lea.hbm %s3297_s0, %s1954_s7 }
  0x63   : > { %s2848_s2 = scalar_select %p45_p9, %s2587_s29, %s47_s19  }
  0x64   : > { %s3338_s14 = sadd.s32 1, %s2575_s26  ;;  %s286_s5 = scalar_lea.vmem [#allocation4], %s1859_s20 }
  0x65   : > { %s2853_s9 = scalar_select %p157_p11, %s2575_s26, %s3338_s14  }
  0x66   : > { %s294_s16 = sshll.u32 %s286_s5, 4  ;;  %p2859_p4 = pnand %p2161_p3, %p2829_p1  ;;  %s2863_s16 = int_to_ptr.vmem [resolvable:$true] %s294_s16 }
  0x67   : > { %s283_s7 = scalar_lea.sflag [#allocation5], %s282_s22  ;;  %s2391_s6 = scalar_lea.hbm %s2845_s1, 128 }
  0x68   : > { %p2392_p5 = scmp.ne.s32.totalorder %s2845_s1, %s2391_s6  ;;  %p2393_p6 = pneg %p2859_p4 }
  0x69   : > { %s2396_s19 = scalar_lea.hbm %s3297_s0, 256  ;;  %p2397_p12 = scmp.lt.u32.totalorder %s2845_s1, %s3297_s0 }
  0x6a   : > { %p2394_p8 = pnand %p2393_p6, %p2392_p5  ;;  %p2398_p2 = scmp.lt.u32.totalorder %s2396_s19, %s2391_s6 }
  0x6b   : > { %p2400_p7 = scmp.lt.u32.totalorder %s2391_s6, %s2845_s1 }
  0x6c   : > { %p2395_p10 = pneg %p2394_p8  ;;  %p2399_p0 = por %p2398_p2, %p2397_p12 }
  0x6e   : > { %p2401_p1 = por %p2400_p7, %p2399_p0 }
  0x70   : > { %p2402_p13 = pnand %p2401_p1, %p2395_p10 }
  0x72   : > { %2405 = shalt.err (!%p2402_p13)
}
  0x73   : > { %s2406_s22 = scalar_lea.vmem %s2863_s16, 128  ;;  %s2613_s13 = smov [#allocation4]  }
  0x74   : > { %p2407_p3 = scmp.ne.s32.totalorder %s2863_s16, %s2406_s22  ;;  %s2411_s17 = sshll.u32 %s2613_s13, 4  ;;  %s2412_s17 = int_to_ptr.vmem [resolvable:$false] %s2411_s17 }
  0x75   : > { %s2413_s24 = scalar_lea.vmem %s2412_s17, 256  ;;  %p2414_p5 = scmp.lt.s32.totalorder %s2863_s16, %s2412_s17 }
  0x76   : > { %p2409_p9 = pnand %p2407_p3, %p2393_p6  ;;  %p2415_p8 = scmp.lt.s32.totalorder %s2413_s24, %s2406_s22 }
  0x78   : > { %p2410_p11 = pneg %p2409_p9  ;;  %p2416_p12 = por %p2415_p8, %p2414_p5 }
  0x7a   : > { %p2417_p2 = pnand %p2416_p12, %p2410_p11 }
  0x7c   : > { %2420 = shalt.err (!%p2417_p2)
}
  0x7d   : > { %2148 = dma.hbm_to_vmem [thread:$0]  (!%p2859_p4), %s2845_s1, 128, %s2863_s16, %s283_s7  }
  0x7e   : > { %p3340_p10 = scmp.ne.s32.totalorder %s3332_s18, 0 }
  0x7f   : > { %s305_s6 = sand.u32 (!%p3340_p10), 1, %s2583_s28   ;;  %p3341_p6 = scmp.ne.s32.totalorder (!%p3340_p10), %s3327_s15, 0 }
  0x80   : > { %303 = sbr.rel (%p3340_p10) target bundleno = 962 (0x3c2), region = 40  ;;  %s1863_s5 = sshll.u32 (!%p3340_p10), %s305_s6, 3 }
  0x81   : > { %s306_s14 = scalar_lea.sflag (!%p3340_p10), [#allocation5], %s305_s6  ;;  %s309_s19 = scalar_lea.vmem (!%p3340_p10), [#allocation4], %s1863_s5 }
  0x87   : > { %2550 = dma.done.wait (%p3341_p6), %s306_s14, 128  }
  0x88   : > { %2552 = vsyncadd (%p3341_p6), %s306_s14, 4294967168  ;;  %p3342_p0 = scmp.eq.s32.totalorder %s2730_s12, 0 }
  0x8a   : > { %2554 = dma.done.wait (%p3342_p0), [#allocation8], 704   ;;  %p3343_p7 = pmov %p3342_p0 }
  0x8b   : > { %v2614_v0 = vmov 0   ;;  %s1867_s1 = sshll.u32 %s2591_s30, 7  ;;  %v398_v1 = vld [vmem:[%s3301_s4] sm:$0xf]  ;;  %v2615_v5 = vmov 1   ;;  %v2616_v6 = vmov 2   ;;  %v392_v36 = vlaneseq }
  0x8c   : > { %2556 = vsyncadd (%p3343_p7), [#allocation8], 4294966592  ;;  %2278 = vset.pattern.permute.xlu1 %v2614_v0  ;;  %2276 = vset.pattern.permute.xlu0 %v2614_v0  ;;  %s2902_s16 = sshra.s32 %s1867_s1, 7  ;;  %v384_v2 = vld [vmem:[%s3300_s3] sm:$0xf]  ;;  %v2617_v14 = vmov 4  }
  0x8d   : > { %401 = vperm.xlu1 %2278, %v398_v1   ;;  %387 = vperm.xlu0 %2276, %v384_v2   ;;  %s1868_s23 = sshll.u32 %s2902_s16, 1  ;;  %v443_v3 = vld [vmem:[%s3300_s3] sm:$0xf]  ;;  %v2618_v15 = vmov 3   ;;  %v2619_v18 = vmov 6   ;;  %v2620_v22 = vmov 7  }
  0x8e   : > { %v490_v4 = vld [vmem:[%s3300_s3] sm:$0xf]  ;;  %s361_s24 = scalar_lea.vmem %s309_s19, %s1868_s23 [#allocation4]  ;;  %v2621_v27 = vmov 5   ;;  %v2622_v33 = vmov 0.0   ;;  %v2623_v34 = vmov 839922192  }
  0x8f   : > { %v362_v7 = vld [vmem:[%s361_s24] sm:$0xf]  ;;  %2000 = vmatprep.subr.bf16.mxu1 %v2622_v33  ;;  %2040 = vmatprep.subr.bf16.mxu0 %v2622_v33  ;;  %v390_v35 = vunpack.c.l.s4 %v2623_v34  ;;  %v2962_v38 = vshrl.u32 %v392_v36, 7  ;;  %s2980_s22 = scalar_lea.vmem [#allocation7], %s1868_s23  ;;  %vm800_vm0 = vcmask 1041408   ;;  %s2624_s16 = smov 109  }
  0x90   : > { %v504_v8 = vld [vmem:[%s3301_s4] sm:$0xf]  ;;  %v2925_v10 = vunpack.c.l.bf16 %v362_v7  ;;  %s2625_s23 = smov 108   ;;  %s2626_s13 = smov 127   ;;  %vm2631_vm1 = vmmov 0   ;;  %vm796_vm2 = vcmask 293888  }
  0x91   : > { %2279 = vset.pattern.permute.xlu1 %v2615_v5  ;;  %2277 = vset.pattern.permute.xlu0 %v2616_v6  ;;  %v457_v9 = vld [vmem:[%s3301_s4] sm:$0xf]  ;;  %v391_v37 = vunpack.c.0.s8 %v390_v35  ;;  %v421_v61 = vsub.s32 0, %v2962_v38  ;;  %v425_v62 = vsub.s32 1, %v2962_v38  ;;  %s2627_s17 = smov 92   ;;  %s2628_s24 = smov 126  }
  0x92   : > { %446 = vperm.xlu1 %2279, %v443_v3   ;;  %493 = vperm.xlu0 %2277, %v490_v4   ;;  %v367_v11 = vmul.f32 0.5, %v2925_v10  ;;  %v585_v12 = vld [vmem:[%s3300_s3] sm:$0xf]  ;;  %s2629_s6 = smov 91   ;;  %s2630_s5 = smov 110   ;;  %vm1170_vm3 = vcmask 891904  }
  0x93   : > { %v538_v13 = vld [vmem:[%s3300_s3] sm:$0xf]  ;;  %v2965_v39 = vsub.s32 %v391_v37, %v2962_v38  ;;  %2046 = vmatprep.mubr.msk.bf16.mxu0 %vm2631_vm1, %v2622_v33  ;;  %2006 = vmatprep.mubr.msk.bf16.mxu1 %vm2631_vm1, %v2622_v33  ;;  %s2632_s14 = smov 90   ;;  %vm1265_vm4 = vcmask 883712   ;;  %vm885_vm5 = vcmask 1039360   ;;  %vm1360_vm6 = vcmask 752640  }
  0x94   : > { %2317 = vtanh.f32 %v367_v11  ;;  %v680_v16 = vld [vmem:[%s3300_s3] sm:$0xf]  ;;  %vm980_vm7 = vcmask 1031168   ;;  %vm1455_vm8 = vcmask 744448   ;;  %vm1075_vm9 = vcmask 900096   ;;  %s3154_s1 = sand.u32 1, %s2571_s25  }
  0x95   : > { %v694_v17 = vld [vmem:[%s3301_s4] sm:$0xf]  ;;  %vm1550_vm10 = vcmask 736256   ;;  %s1866_s19 = sshll.u32 %s3154_s1, 2  ;;  %s3344_s18 = sld [smem:[#allocation20_spill]] }
  0x96   : > { %2280 = vset.pattern.permute.xlu1 %v2616_v6  ;;  %2281 = vset.pattern.permute.xlu0 %v2615_v5  ;;  %v599_v19 = vld [vmem:[%s3301_s4] sm:$0xf]  ;;  %s343_s21 = scalar_lea.vmem [#allocation10], %s1866_s19  ;;  %s2119_s15 = smul.u32 3, %s2595_s8 }
  0x97   : > { %507 = vperm.xlu1 %2280, %v504_v8   ;;  %460 = vperm.xlu0 %2281, %v457_v9   ;;  %v728_v20 = vld [vmem:[%s3300_s3] sm:$0xf] }
  0x98   : > { %v633_v25 = vld [vmem:[%s3300_s3] sm:$0xf]  ;;  %s3160_s7 = sadd.s32 %s2591_s30, %s2119_s15 }
  0x99   : > { %v552_v29 = vld [vmem:[%s3301_s4] sm:$0xf]  ;;  %s1949_s20 = sshll.u32 %s3160_s7, 6 }
  0x9a   : > { %v647_v31 = vld [vmem:[%s3301_s4] sm:$0xf] }
  0x9b   : > { %2282 = vset.pattern.permute.xlu1 %v2617_v14  ;;  %2284 = vset.pattern.permute.xlu0 %v2618_v15  ;;  %v742_v32 = vld [vmem:[%s3301_s4] sm:$0xf]  ;;  %p3346_p1 = scmp.ne.s32.totalorder %s3344_s18, 0 }
  0x9c   : > { %588 = vperm.xlu1 %2282, %v585_v12   ;;  %541 = vperm.xlu0 %2284, %v538_v13   ;;  %v366_v63 = vld [vmem:[%s2980_s22] ss:$2 sm:$0x3] }
  0x9d   : > { %v422_v6 = vrot.slane %v366_v63, %v421_v61  ;;  %v426_v7 = vrot.slane %v366_v63, %v425_v62 }
  0x9e   : > { %v2318_v21 = vpop.eup %2317 }
  0x9f   : > { %v369_v23 = vadd.f32 1.0, %v2318_v21 }
  0xa0   : > { %2283 = vset.pattern.permute.xlu1 %v2619_v18  ;;  %2287 = vset.pattern.permute.xlu0 %v2619_v18 }
  0xa1   : > { %683 = vperm.xlu1 %2283, %v680_v16   ;;  %697 = vperm.xlu0 %2287, %v694_v17   ;;  %v370_v24 = vmul.f32 0.5, %v369_v23  ;;  %v2985_v16 = vcombine.low %v422_v6, %v426_v7 }
  0xa3   : > { %v371_v26 = vmul.f32 %v370_v24, %v2925_v10 }
  0xa5   : > { %2285 = vset.pattern.permute.xlu1 %v2617_v14  ;;  %2290 = vset.pattern.permute.xlu0 %v2620_v22  ;;  %v373_v28 = vcombine.high %v371_v26, %v371_v26 }
  0xa6   : > { %602 = vperm.xlu1 %2285, %v599_v19   ;;  %731 = vperm.xlu0 %2290, %v728_v20  }
  0xa7   : > { %v1955_v30 = vpack.c.bf16 %v373_v28, %v371_v26 }
  0xa9   : > { %383 = vst [vmem:[#allocation2] sm:$0x33] %v1955_v30 }
  0xaa   : > { %2286 = vset.pattern.permute.xlu1 %v2621_v27 }
  0xab   : > { %636 = vperm.xlu1 %2286, %v633_v25  }
  0xaf   : > { %2288 = vset.pattern.permute.xlu1 %v2618_v15 }
  0xb0   : > { %555 = vperm.xlu1 %2288, %v552_v29  }
  0xb4   : > { %2289 = vset.pattern.permute.xlu1 %v2621_v27 }
  0xb5   : > { %650 = vperm.xlu1 %2289, %v647_v31  }
  0xb9   : > { %2291 = vset.pattern.permute.xlu1 %v2620_v22 }
  0xba   : > { %745 = vperm.xlu1 %2291, %v742_v32  }
 0x10c   : > { %v402_v40 = vpop.permute.xlu1 %401  ;;  %v388_v41 = vpop.permute.xlu0 %387 }
 0x10d   : > { %v395_v42 = vrot.slane %v388_v41, %v2965_v39  ;;  %v409_v43 = vrot.slane %v402_v40, %v2965_v39 }
 0x10f   : > { %v397_v44 = vsub.f32 %v2925_v10, %v395_v42 }
 0x111   : > { %v411_v45 = vmul.f32 %v409_v43, %v397_v44  ;;  %v447_v46 = vpop.permute.xlu1 %446  ;;  %v494_v47 = vpop.permute.xlu0 %493 }
 0x112   : > { %v501_v48 = vrot.slane %v494_v47, %v2965_v39  ;;  %v454_v50 = vrot.slane %v447_v46, %v2965_v39 }
 0x113   : > { %v412_v49 = vmul.f32 %v411_v45, %v411_v45 }
 0x114   : > { %v503_v52 = vsub.f32 %v2925_v10, %v501_v48  ;;  %v456_v56 = vsub.f32 %v2925_v10, %v454_v50 }
 0x115   : > { %v414_v51 = vmul.f32 -0.5, %v412_v49  ;;  %v1871_v15 = vadd.f32 -1.0, %v412_v49 }
 0x116   : > { %v508_v53 = vpop.permute.xlu1 %507  ;;  %v461_v54 = vpop.permute.xlu0 %460 }
 0x117   : > { %v415_v55 = vmul.f32 1.442695, %v414_v51  ;;  %v515_v57 = vrot.slane %v508_v53, %v2965_v39  ;;  %v468_v58 = vrot.slane %v461_v54, %v2965_v39 }
 0x119   : > { %2319 = vpow2.f32 %v415_v55  ;;  %v517_v59 = vmul.f32 %v515_v57, %v503_v52  ;;  %v470_v60 = vmul.f32 %v468_v58, %v456_v56 }
 0x11b   : > { %v518_v0 = vmul.f32 %v517_v59, %v517_v59  ;;  %v471_v1 = vmul.f32 %v470_v60, %v470_v60  ;;  %v589_v2 = vpop.permute.xlu1 %588  ;;  %v542_v3 = vpop.permute.xlu0 %541 }
 0x11c   : > { %v596_v17 = vrot.slane %v589_v2, %v2965_v39  ;;  %v549_v32 = vrot.slane %v542_v3, %v2965_v39 }
 0x11d   : > { %v520_v4 = vmul.f32 -0.5, %v518_v0  ;;  %v473_v5 = vmul.f32 -0.5, %v471_v1  ;;  %v1875_v31 = vadd.f32 -1.0, %v518_v0  ;;  %v1873_v40 = vadd.f32 -1.0, %v471_v1 }
 0x11e   : > { %v598_v24 = vsub.f32 %v2925_v10, %v596_v17  ;;  %v551_v48 = vsub.f32 %v2925_v10, %v549_v32 }
 0x11f   : > { %v521_v8 = vmul.f32 1.442695, %v520_v4  ;;  %v474_v9 = vmul.f32 1.442695, %v473_v5 }
 0x120   : > { %v684_v11 = vpop.permute.xlu1 %683  ;;  %v698_v12 = vpop.permute.xlu0 %697 }
 0x121   : > { %2321 = vpow2.f32 %v521_v8  ;;  %v691_v13 = vrot.slane %v684_v11, %v2965_v39  ;;  %v705_v14 = vrot.slane %v698_v12, %v2965_v39 }
 0x122   : > { %2323 = vpow2.f32 %v474_v9 }
 0x123   : > { %v2320_v18 = vpop.eup %2319  ;;  %v693_v19 = vsub.f32 %v2925_v10, %v691_v13 }
 0x124   : > { %v417_v20 = vmul.f32 %v2320_v18, %v1871_v15 }
 0x125   : > { %v707_v21 = vmul.f32 %v705_v14, %v693_v19  ;;  %v603_v22 = vpop.permute.xlu1 %602  ;;  %v732_v56 = vpop.permute.xlu0 %731 }
 0x126   : > { %v429_v23 = vmul.f32 %v2985_v16, %v417_v20  ;;  %v610_v25 = vrot.slane %v603_v22, %v2965_v39  ;;  %v739_v63 = vrot.slane %v732_v56, %v2965_v39 }
 0x127   : > { %v708_v26 = vmul.f32 %v707_v21, %v707_v21 }
 0x128   : > { %v431_v27 = vcombine.high %v429_v23, %v429_v23  ;;  %v612_v28 = vmul.f32 %v610_v25, %v598_v24  ;;  %v741_v8 = vsub.f32 %v2925_v10, %v739_v63 }
 0x129   : > { %v710_v29 = vmul.f32 -0.5, %v708_v26  ;;  %v1883_v2 = vadd.f32 -1.0, %v708_v26 }
 0x12a   : > { %v1956_v30 = vpack.c.bf16 %v431_v27, %v429_v23  ;;  %v613_v34 = vmul.f32 %v612_v28, %v612_v28  ;;  %v637_v35 = vpop.permute.xlu1 %636 }
 0x12b   : > { %v2322_v37 = vpop.eup %2321  ;;  %v711_v41 = vmul.f32 1.442695, %v710_v29  ;;  %v644_v55 = vrot.slane %v637_v35, %v2965_v39 }
 0x12c   : > { %v2324_v42 = vpop.eup %2323  ;;  %v440_v43 = vrot.slane %v1956_v30, 6  ;;  %v523_v44 = vmul.f32 %v2322_v37, %v1875_v31  ;;  %v615_v45 = vmul.f32 -0.5, %v613_v34  ;;  %v1879_v9 = vadd.f32 -1.0, %v613_v34 }
 0x12d   : > { %v476_v46 = vmul.f32 %v2324_v42, %v1873_v40  ;;  %2325 = vpow2.f32 %v711_v41  ;;  %v646_v0 = vsub.f32 %v2925_v10, %v644_v55 }
 0x12e   : > { %442 = vst [vmem:[#allocation2] sm:$0xcc] %v440_v43  ;;  %v524_v47 = vmul.f32 %v523_v44, %v2985_v16  ;;  %v616_v49 = vmul.f32 1.442695, %v615_v45 }
 0x12f   : > { %v477_v50 = vmul.f32 %v476_v46, %v2985_v16  ;;  %v556_v51 = vpop.permute.xlu1 %555 }
 0x130   : > { %v526_v52 = vcombine.high %v524_v47, %v524_v47  ;;  %2327 = vpow2.f32 %v616_v49  ;;  %v563_v53 = vrot.slane %v556_v51, %v2965_v39 }
 0x131   : > { %v479_v54 = vcombine.high %v477_v50, %v477_v50 }
 0x132   : > { %v1958_v57 = vpack.c.bf16 %v526_v52, %v524_v47  ;;  %v565_v58 = vmul.f32 %v563_v53, %v551_v48 }
 0x133   : > { %v1957_v59 = vpack.c.bf16 %v479_v54, %v477_v50 }
 0x134   : > { %v535_v60 = vrot.slane %v1958_v57, 6  ;;  %v566_v61 = vmul.f32 %v565_v58, %v565_v58  ;;  %v651_v62 = vpop.permute.xlu1 %650 }
 0x135   : > { %489 = vst [vmem:[#allocation2 + $0x8] sm:$0x33] %v1957_v59  ;;  %v658_v1 = vrot.slane %v651_v62, %v2965_v39 }
 0x136   : > { %537 = vst [vmem:[#allocation2 + $0x8] sm:$0xcc] %v535_v60  ;;  %v568_v3 = vmul.f32 -0.5, %v566_v61  ;;  %v1877_v30 = vadd.f32 -1.0, %v566_v61 }
 0x137   : > { %v2326_v4 = vpop.eup %2325  ;;  %v660_v5 = vmul.f32 %v658_v1, %v646_v0 }
 0x138   : > { %v713_v6 = vmul.f32 %v2326_v4, %v1883_v2  ;;  %v569_v7 = vmul.f32 1.442695, %v568_v3 }
 0x139   : > { %v661_v11 = vmul.f32 %v660_v5, %v660_v5  ;;  %v746_v12 = vpop.permute.xlu1 %745 }
 0x13a   : > { %v2328_v13 = vpop.eup %2327  ;;  %v714_v14 = vmul.f32 %v713_v6, %v2985_v16  ;;  %2329 = vpow2.f32 %v569_v7  ;;  %v753_v15 = vrot.slane %v746_v12, %v2965_v39 }
 0x13b   : > { %v618_v17 = vmul.f32 %v2328_v13, %v1879_v9  ;;  %v663_v18 = vmul.f32 -0.5, %v661_v11  ;;  %v1881_v35 = vadd.f32 -1.0, %v661_v11 }
 0x13c   : > { %v716_v19 = vcombine.high %v714_v14, %v714_v14  ;;  %v755_v20 = vmul.f32 %v753_v15, %v741_v8 }
 0x13d   : > { %v619_v21 = vmul.f32 %v618_v17, %v2985_v16  ;;  %v664_v22 = vmul.f32 1.442695, %v663_v18  ;;  %v2292_v23 = vld [vmem:[#allocation2] ss:$8 sps:$4 sm:$0xff]   ;;  %v2309_v12 = vld [vmem:[#allocation2 + $0x4] ss:$8 sps:$4 sm:$0xff]  }
 0x13e   : > { %v1962_v24 = vpack.c.bf16 %v716_v19, %v714_v14  ;;  %v756_v25 = vmul.f32 %v755_v20, %v755_v20  ;;  %2001 = vmatpush3.bf16.msra.mxu1 %v2292_v23  ;;  %v2311_v13 = vld [vmem:[#allocation2] ss:$8 sps:$4 sm:$0xff]  }
 0x13f   : > { %v621_v10 = vcombine.high %v619_v21, %v619_v21  ;;  %2331 = vpow2.f32 %v664_v22  ;;  %2002 = vmatprep.subr.bf16.mxu1 %v2622_v33  ;;  %v775_v17 = vld [vmem:[#allocation9] sm:$0xf] }
 0x140   : > { %v725_v26 = vrot.slane %v1962_v24, 6  ;;  %v758_v27 = vmul.f32 -0.5, %v756_v25  ;;  %v1885_v44 = vadd.f32 -1.0, %v756_v25 }
 0x141   : > { %v1960_v28 = vpack.c.bf16 %v621_v10, %v619_v21 }
 0x142   : > { %727 = vst [vmem:[#allocation2 + $0x18] sm:$0xcc] %v725_v26  ;;  %v759_v39 = vmul.f32 1.442695, %v758_v27 }
 0x143   : > { %v630_v29 = vrot.slane %v1960_v28, 6 }
 0x144   : > { %v2330_v31 = vpop.eup %2329  ;;  %2333 = vpow2.f32 %v759_v39 }
 0x145   : > { %632 = vst [vmem:[#allocation2 + $0x10] sm:$0xcc] %v630_v29  ;;  %v571_v32 = vmul.f32 %v2330_v31, %v1877_v30 }
 0x147   : > { %v572_v34 = vmul.f32 %v571_v32, %v2985_v16 }
 0x149   : > { %v2332_v37 = vpop.eup %2331  ;;  %v574_v40 = vcombine.high %v572_v34, %v572_v34 }
 0x14a   : > { %v666_v41 = vmul.f32 %v2332_v37, %v1881_v35 }
 0x14b   : > { %v1959_v42 = vpack.c.bf16 %v574_v40, %v572_v34 }
 0x14c   : > { %v667_v43 = vmul.f32 %v666_v41, %v2985_v16 }
 0x14d   : > { %584 = vst [vmem:[#allocation2 + $0x10] sm:$0x33] %v1959_v42 }
 0x14e   : > { %v2334_v45 = vpop.eup %2333  ;;  %v669_v46 = vcombine.high %v667_v43, %v667_v43 }
 0x14f   : > { %v761_v47 = vmul.f32 %v2334_v45, %v1885_v44 }
 0x150   : > { %v1961_v48 = vpack.c.bf16 %v669_v46, %v667_v43 }
 0x151   : > { %v762_v49 = vmul.f32 %v761_v47, %v2985_v16  ;;  %v1131_v47 = vld [vmem:[#allocation9 + $0x10] sm:$0xf] }
 0x152   : > { %679 = vst [vmem:[#allocation2 + $0x18] sm:$0x33] %v1961_v48 }
 0x153   : > { %v764_v50 = vcombine.high %v762_v49, %v762_v49 }
 0x155   : > { %v1963_v51 = vpack.c.bf16 %v764_v50, %v762_v49 }
 0x157   : > { %774 = vst [vmem:[#allocation2 + $0x20] sm:$0x33] %v1963_v51 }
 0x159   : > { %v2293_v52 = vld [vmem:[#allocation2 + $0x10] ss:$8 sps:$4 sm:$0xff]   ;;  %v2312_v14 = vld [vmem:[#allocation2 + $0x14] ss:$8 sps:$4 sm:$0xff]  }
 0x15a   : > { %2003 = vmatpush3.bf16.msra.mxu1 %v2293_v52  ;;  %v2314_v15 = vld [vmem:[#allocation2 + $0x10] ss:$8 sps:$4 sm:$0xff]  }
 0x15b   : > { %2004 = vmatprep.subr.bf16.mxu1 %v2622_v33 }
 0x15e   : > { %v1136_v53 = vld [vmem:[#allocation2 + $0x20] sm:$0x33] }
 0x15f   : > { %v1917_v54 = vcombine.high %v1136_v53, %v1136_v53  ;;  %v1916_v55 = vcombine.low %v1136_v53, %v1136_v53  ;;  %v2296_v56 = vld [vmem:[#allocation2 + $0x20] ss:$0 sps:$4 sm:$0x33]  }
 0x160   : > { %v1231_v57 = vld [vmem:[#allocation2 + $0x20] sm:$0x33]  ;;  %v802_v16 = vsel %vm800_vm0, %v2296_v56, 0 }
 0x161   : > { %1168 = vrot.lane.b32.xlu0 %v1917_v54, %s2624_s16  ;;  %1166 = vrot.lane.b32.xlu1 %v1916_v55, %s2624_s16  ;;  %v1924_v58 = vcombine.high %v1231_v57, %v1231_v57  ;;  %v1923_v59 = vcombine.low %v1231_v57, %v1231_v57  ;;  %v851_v60 = vld [vmem:[#allocation2 + $0x20] sm:$0x33] }
 0x162   : > { %2005 = vmatpush3.bf16.msra.mxu1 %v802_v16  ;;  %v1896_v61 = vcombine.high %v851_v60, %v851_v60  ;;  %v1895_v62 = vcombine.low %v851_v60, %v851_v60  ;;  %v1326_v63 = vld [vmem:[#allocation2 + $0x20] sm:$0x33] }
 0x163   : > { %2010 = vmatprep.subr.bf16.mxu1 %v2622_v33  ;;  %v1931_v0 = vcombine.high %v1326_v63, %v1326_v63  ;;  %v1930_v1 = vcombine.low %v1326_v63, %v1326_v63  ;;  %v946_v2 = vld [vmem:[#allocation2 + $0x20] sm:$0x33] }
 0x164   : > { %v1903_v3 = vcombine.high %v946_v2, %v946_v2  ;;  %v1902_v4 = vcombine.low %v946_v2, %v946_v2  ;;  %v1421_v5 = vld [vmem:[#allocation2 + $0x20] sm:$0x33] }
 0x165   : > { %1263 = vrot.lane.b32.xlu0 %v1924_v58, %s2625_s23  ;;  %1261 = vrot.lane.b32.xlu1 %v1923_v59, %s2625_s23  ;;  %v1938_v6 = vcombine.high %v1421_v5, %v1421_v5  ;;  %v1937_v7 = vcombine.low %v1421_v5, %v1421_v5  ;;  %v1041_v8 = vld [vmem:[#allocation2 + $0x20] sm:$0x33]  ;;  %v1226_v58 = vld [vmem:[#allocation9 + $0x14] sm:$0xf] }
 0x166   : > { %v1910_v9 = vcombine.high %v1041_v8, %v1041_v8  ;;  %v1909_v11 = vcombine.low %v1041_v8, %v1041_v8  ;;  %2007 = vmatmul.mubr.msk.bf16.vlgmr.msra.gmra.mrb[0].mxu1 %vm796_vm2, %v775_v17  ;;  %v1516_v18 = vld [vmem:[#allocation2 + $0x20] sm:$0x33] }
 0x167   : > { %2016 = vmatprep.mubr.msk.bf16.mxu1 %vm2631_vm1, %v2622_v33  ;;  %v1945_v19 = vcombine.high %v1516_v18, %v1516_v18  ;;  %v1944_v20 = vcombine.low %v1516_v18, %v1516_v18  ;;  %v846_v5 = vld [vmem:[#allocation9 + $0x4] sm:$0xf] }
 0x169   : > { %883 = vrot.lane.b32.xlu0 %v1896_v61, %s2626_s13  ;;  %881 = vrot.lane.b32.xlu1 %v1895_v62, %s2626_s13 }
 0x16d   : > { %1358 = vrot.lane.b32.xlu0 %v1931_v0, %s2627_s17  ;;  %1356 = vrot.lane.b32.xlu1 %v1930_v1, %s2627_s17 }
 0x171   : > { %978 = vrot.lane.b32.xlu0 %v1903_v3, %s2628_s24  ;;  %976 = vrot.lane.b32.xlu1 %v1902_v4, %s2628_s24 }
 0x175   : > { %1453 = vrot.lane.b32.xlu0 %v1938_v6, %s2629_s6  ;;  %1451 = vrot.lane.b32.xlu1 %v1937_v7, %s2629_s6 }
 0x179   : > { %1073 = vrot.lane.b32.xlu0 %v1910_v9, %s2630_s5  ;;  %1071 = vrot.lane.b32.xlu1 %v1909_v11, %s2630_s5  ;;  %v1321_v11 = vld [vmem:[#allocation9 + $0x18] sm:$0xf] }
 0x17d   : > { %1160 = vrot.lane.b32.xlu0 %v2309_v12, %s2624_s16  ;;  %1158 = vrot.lane.b32.xlu1 %v2311_v13, %s2624_s16 }
 0x181   : > { %1164 = vrot.lane.b32.xlu0 %v2312_v14, %s2624_s16  ;;  %1162 = vrot.lane.b32.xlu1 %v2314_v15, %s2624_s16 }
 0x185   : > { %1255 = vrot.lane.b32.xlu0 %v2309_v12, %s2625_s23  ;;  %1253 = vrot.lane.b32.xlu1 %v2311_v13, %s2625_s23 }
 0x189   : > { %1259 = vrot.lane.b32.xlu0 %v2312_v14, %s2625_s23  ;;  %1257 = vrot.lane.b32.xlu1 %v2314_v15, %s2625_s23  ;;  %s3345_s23 = sld [smem:[#allocation25_spill]] }
 0x18d   : > { %875 = vrot.lane.b32.xlu0 %v2309_v12, %s2626_s13  ;;  %873 = vrot.lane.b32.xlu1 %v2311_v13, %s2626_s13 }
 0x191   : > { %1350 = vrot.lane.b32.xlu0 %v2309_v12, %s2627_s17  ;;  %1348 = vrot.lane.b32.xlu1 %v2311_v13, %s2627_s17 }
 0x195   : > { %879 = vrot.lane.b32.xlu0 %v2312_v14, %s2626_s13  ;;  %877 = vrot.lane.b32.xlu1 %v2314_v15, %s2626_s13  ;;  %s3166_s13 = scalar_lea.hbm %s3345_s23, %s1949_s20 }
 0x199   : > { %1354 = vrot.lane.b32.xlu0 %v2312_v14, %s2627_s17  ;;  %1352 = vrot.lane.b32.xlu1 %v2314_v15, %s2627_s17  ;;  %s1660_s17 = sshll.u32 %s343_s21, 4  ;;  %s1661_s17 = int_to_ptr.vmem [resolvable:$true] %s1660_s17 }
 0x19d   : > { %970 = vrot.lane.b32.xlu0 %v2309_v12, %s2628_s24  ;;  %968 = vrot.lane.b32.xlu1 %v2311_v13, %s2628_s24 }
 0x1a1   : > { %1445 = vrot.lane.b32.xlu0 %v2309_v12, %s2629_s6  ;;  %1443 = vrot.lane.b32.xlu1 %v2311_v13, %s2629_s6 }
 0x1a5   : > { %974 = vrot.lane.b32.xlu0 %v2312_v14, %s2628_s24  ;;  %972 = vrot.lane.b32.xlu1 %v2314_v15, %s2628_s24  ;;  %s1637_s24 = scalar_lea.sflag [#allocation6], %s3154_s1 }
 0x1a9   : > { %1449 = vrot.lane.b32.xlu0 %v2312_v14, %s2629_s6  ;;  %1447 = vrot.lane.b32.xlu1 %v2314_v15, %s2629_s6  ;;  %s2421_s6 = scalar_lea.vmem %s1661_s17, 64 }
 0x1aa   : > { %p2422_p4 = scmp.ne.s32.totalorder %s1661_s17, %s2421_s6 }
 0x1ac   : > { %p2423_p13 = pnand %p2422_p4, %p3346_p1 }
 0x1ad   : > { %1065 = vrot.lane.b32.xlu0 %v2309_v12, %s2630_s5  ;;  %1063 = vrot.lane.b32.xlu1 %v2311_v13, %s2630_s5 }
 0x1ae   : > { %p2424_p3 = pneg %p2423_p13 }
 0x1b1   : > { %1540 = vrot.lane.b32.xlu0 %v2309_v12, %s2632_s14  ;;  %1538 = vrot.lane.b32.xlu1 %v2311_v13, %s2632_s14 }
 0x1b5   : > { %1069 = vrot.lane.b32.xlu0 %v2312_v14, %s2630_s5  ;;  %1067 = vrot.lane.b32.xlu1 %v2314_v15, %s2630_s5  ;;  %s2633_s5 = smov [#allocation10]  }
 0x1b9   : > { %1544 = vrot.lane.b32.xlu0 %v2312_v14, %s2632_s14  ;;  %1542 = vrot.lane.b32.xlu1 %v2314_v15, %s2632_s14 }
 0x1bd   : > { %1548 = vrot.lane.b32.xlu0 %v1945_v19, %s2632_s14  ;;  %1546 = vrot.lane.b32.xlu1 %v1944_v20, %s2632_s14  ;;  %s2425_s14 = sshll.u32 %s2633_s5, 4  ;;  %s2426_s14 = int_to_ptr.vmem [resolvable:$false] %s2425_s14 }
 0x1be   : > { %s2427_s30 = scalar_lea.vmem %s2426_s14, 128  ;;  %p2428_p9 = scmp.lt.s32.totalorder %s1661_s17, %s2426_s14 }
 0x1bf   : > { %p2429_p11 = scmp.lt.s32.totalorder %s2427_s30, %s2421_s6 }
 0x1c1   : > { %p2430_p5 = por %p2429_p11, %p2428_p9 }
 0x1c3   : > { %p2431_p8 = pnand %p2430_p5, %p2424_p3 }
 0x1d3   : > { %v1169_v21 = vpop.permute.xlu0 %1168  ;;  %v1167_v22 = vpop.permute.xlu1 %1166 }
 0x1d4   : > { %v1173_v43 = vsel %vm1170_vm3, %v1167_v22, %v1169_v21 }
 0x1d5   : > { %v1180_v46 = vsel %vm800_vm0, %v1173_v43, 0 }
 0x1d7   : > { %v1264_v23 = vpop.permute.xlu0 %1263  ;;  %v1262_v24 = vpop.permute.xlu1 %1261 }
 0x1d8   : > { %v1268_v55 = vsel %vm1265_vm4, %v1262_v24, %v1264_v23 }
 0x1d9   : > { %v1275_v16 = vsel %vm800_vm0, %v1268_v55, 0 }
 0x1db   : > { %v884_v25 = vpop.permute.xlu0 %883  ;;  %v882_v10 = vpop.permute.xlu1 %881 }
 0x1dc   : > { %v888_v63 = vsel %vm885_vm5, %v882_v10, %v884_v25  ;;  %v941_v25 = vld [vmem:[#allocation9 + $0x8] sm:$0xf] }
 0x1dd   : > { %v895_v2 = vsel %vm800_vm0, %v888_v63, 0 }
 0x1df   : > { %v3061_v26 = vpop.permute.xlu0 %1358  ;;  %v3063_v27 = vpop.permute.xlu1 %1356 }
 0x1e0   : > { %v1363_v4 = vsel %vm1360_vm6, %v3063_v27, %v3061_v26 }
 0x1e1   : > { %v1370_v8 = vsel %vm800_vm0, %v1363_v4, 0 }
 0x1e3   : > { %v3065_v28 = vpop.permute.xlu0 %978  ;;  %v3067_v39 = vpop.permute.xlu1 %976 }
 0x1e4   : > { %v983_v19 = vsel %vm980_vm7, %v3067_v39, %v3065_v28  ;;  %v1416_v39 = vld [vmem:[#allocation9 + $0x1c] sm:$0xf] }
 0x1e5   : > { %v990_v22 = vsel %vm800_vm0, %v983_v19, 0 }
 0x1e7   : > { %v3069_v29 = vpop.permute.xlu0 %1453  ;;  %v3071_v30 = vpop.permute.xlu1 %1451 }
 0x1e8   : > { %v1458_v24 = vsel %vm1455_vm8, %v3071_v30, %v3069_v29 }
 0x1e9   : > { %v1465_v27 = vsel %vm800_vm0, %v1458_v24, 0 }
 0x1eb   : > { %v3073_v31 = vpop.permute.xlu0 %1073  ;;  %v3075_v32 = vpop.permute.xlu1 %1071 }
 0x1ef   : > { %v1161_v34 = vpop.permute.xlu0 %1160  ;;  %v1159_v35 = vpop.permute.xlu1 %1158 }
 0x1f0   : > { %v1171_v37 = vsel %vm1170_vm3, %v1159_v35, %v1161_v34 }
 0x1f1   : > { %2041 = vmatpush3.bf16.msra.mxu0 %v1171_v37 }
 0x1f2   : > { %2042 = vmatprep.subr.bf16.mxu0 %v2622_v33 }
 0x1f3   : > { %v1165_v40 = vpop.permute.xlu0 %1164  ;;  %v1163_v41 = vpop.permute.xlu1 %1162 }
 0x1f4   : > { %v1172_v42 = vsel %vm1170_vm3, %v1163_v41, %v1165_v40  ;;  %v1078_v41 = vsel %vm1075_vm9, %v3075_v32, %v3073_v31 }
 0x1f5   : > { %2043 = vmatpush3.bf16.msra.mxu0 %v1172_v42 }
 0x1f6   : > { %2044 = vmatprep.subr.bf16.mxu0 %v2622_v33 }
 0x1f7   : > { %v1256_v44 = vpop.permute.xlu0 %1255  ;;  %v1254_v45 = vpop.permute.xlu1 %1253 }
 0x1f8   : > { %v1266_v50 = vsel %vm1265_vm4, %v1254_v45, %v1256_v44  ;;  %v1085_v44 = vsel %vm800_vm0, %v1078_v41, 0 }
 0x1f9   : > { %2045 = vmatpush3.bf16.msra.mxu0 %v1180_v46  ;;  %v1036_v46 = vld [vmem:[#allocation9 + $0xc] sm:$0xf] }
 0x1fa   : > { %2050 = vmatprep.subr.bf16.mxu0 %v2622_v33 }
 0x1fb   : > { %v1260_v48 = vpop.permute.xlu0 %1259  ;;  %v1258_v49 = vpop.permute.xlu1 %1257 }
 0x1fc   : > { %2047 = vmatmul.mubr.msk.bf16.vlgmr.msra.gmra.mrb[0].mxu0 %vm796_vm2, %v1131_v47  ;;  %v1267_v53 = vsel %vm1265_vm4, %v1258_v49, %v1260_v48  ;;  %v1511_v49 = vld [vmem:[#allocation9 + $0x20] sm:$0xf] }
 0x1fd   : > { %2051 = vmatpush3.bf16.msra.mxu0 %v1266_v50  ;;  %2056 = vmatprep.mubr.msk.bf16.mxu0 %vm2631_vm1, %v2622_v33 }
 0x1fe   : > { %2052 = vmatprep.subr.bf16.mxu0 %v2622_v33 }
 0x1ff   : > { %v876_v51 = vpop.permute.xlu0 %875  ;;  %v874_v52 = vpop.permute.xlu1 %873 }
 0x200   : > { %v886_v54 = vsel %vm885_vm5, %v874_v52, %v876_v51 }
 0x201   : > { %2011 = vmatpush3.bf16.msra.mxu1 %v886_v54  ;;  %2053 = vmatpush3.bf16.msra.mxu0 %v1267_v53  ;;  %v1947_v54 = vld [vmem:[%s2980_s22 + $0x1] ss:$0 sm:$0xff] }
 0x202   : > { %2054 = vmatprep.subr.bf16.mxu0 %v2622_v33  ;;  %2012 = vmatprep.subr.bf16.mxu1 %v2622_v33 }
 0x203   : > { %v1351_v56 = vpop.permute.xlu0 %1350  ;;  %v1349_v57 = vpop.permute.xlu1 %1348 }
 0x204   : > { %v1361_v61 = vsel %vm1360_vm6, %v1349_v57, %v1351_v56 }
 0x205   : > { %2055 = vmatpush3.bf16.msra.mxu0 %v1275_v16 }
 0x206   : > { %2060 = vmatprep.subr.bf16.mxu0 %v2622_v33 }
 0x207   : > { %v880_v59 = vpop.permute.xlu0 %879  ;;  %v878_v60 = vpop.permute.xlu1 %877 }
 0x208   : > { %v887_v62 = vsel %vm885_vm5, %v878_v60, %v880_v59  ;;  %2057 = vmatmul.mubr.msk.bf16.vlgmr.msra.gmra.mrb[0].mxu0 %vm796_vm2, %v1226_v58 }
 0x209   : > { %2013 = vmatpush3.bf16.msra.mxu1 %v887_v62  ;;  %2061 = vmatpush3.bf16.msra.mxu0 %v1361_v61 }
 0x20a   : > { %2014 = vmatprep.subr.bf16.mxu1 %v2622_v33  ;;  %2062 = vmatprep.subr.bf16.mxu0 %v2622_v33 }
 0x20b   : > { %v1355_v0 = vpop.permute.xlu0 %1354  ;;  %v1353_v1 = vpop.permute.xlu1 %1352  ;;  %2066 = vmatprep.mubr.msk.bf16.mxu0 %vm2631_vm1, %v2622_v33 }
 0x20c   : > { %v1362_v3 = vsel %vm1360_vm6, %v1353_v1, %v1355_v0 }
 0x20d   : > { %2015 = vmatpush3.bf16.msra.mxu1 %v895_v2  ;;  %2063 = vmatpush3.bf16.msra.mxu0 %v1362_v3 }
 0x20e   : > { %2020 = vmatprep.subr.bf16.mxu1 %v2622_v33  ;;  %2064 = vmatprep.subr.bf16.mxu0 %v2622_v33 }
 0x20f   : > { %v971_v6 = vpop.permute.xlu0 %970  ;;  %v969_v7 = vpop.permute.xlu1 %968 }
 0x210   : > { %v981_v9 = vsel %vm980_vm7, %v969_v7, %v971_v6  ;;  %2017 = vmatmul.mubr.msk.bf16.vlgmr.msra.gmra.mrb[0].mxu1 %vm796_vm2, %v846_v5 }
 0x211   : > { %2021 = vmatpush3.bf16.msra.mxu1 %v981_v9  ;;  %2065 = vmatpush3.bf16.msra.mxu0 %v1370_v8 }
 0x212   : > { %2070 = vmatprep.subr.bf16.mxu0 %v2622_v33  ;;  %2022 = vmatprep.subr.bf16.mxu1 %v2622_v33 }
 0x213   : > { %v1446_v12 = vpop.permute.xlu0 %1445  ;;  %v1444_v13 = vpop.permute.xlu1 %1443  ;;  %2026 = vmatprep.mubr.msk.bf16.mxu1 %vm2631_vm1, %v2622_v33 }
 0x214   : > { %v1456_v14 = vsel %vm1455_vm8, %v1444_v13, %v1446_v12  ;;  %2067 = vmatmul.mubr.msk.bf16.vlgmr.msra.gmra.mrb[0].mxu0 %vm796_vm2, %v1321_v11 }
 0x215   : > { %2071 = vmatpush3.bf16.msra.mxu0 %v1456_v14  ;;  %2076 = vmatprep.mubr.msk.bf16.mxu0 %vm2631_vm1, %v2622_v33 }
 0x216   : > { %2072 = vmatprep.subr.bf16.mxu0 %v2622_v33 }
 0x217   : > { %v975_v15 = vpop.permute.xlu0 %974  ;;  %v973_v17 = vpop.permute.xlu1 %972 }
 0x218   : > { %v982_v18 = vsel %vm980_vm7, %v973_v17, %v975_v15 }
 0x219   : > { %2023 = vmatpush3.bf16.msra.mxu1 %v982_v18 }
 0x21a   : > { %2024 = vmatprep.subr.bf16.mxu1 %v2622_v33 }
 0x21b   : > { %v1450_v20 = vpop.permute.xlu0 %1449  ;;  %v1448_v21 = vpop.permute.xlu1 %1447 }
 0x21c   : > { %v1457_v23 = vsel %vm1455_vm8, %v1448_v21, %v1450_v20 }
 0x21d   : > { %2025 = vmatpush3.bf16.msra.mxu1 %v990_v22  ;;  %2073 = vmatpush3.bf16.msra.mxu0 %v1457_v23 }
 0x21e   : > { %2030 = vmatprep.subr.bf16.mxu1 %v2622_v33  ;;  %2074 = vmatprep.subr.bf16.mxu0 %v2622_v33 }
 0x21f   : > { %v1066_v10 = vpop.permute.xlu0 %1065  ;;  %v1064_v26 = vpop.permute.xlu1 %1063 }
 0x220   : > { %v1076_v28 = vsel %vm1075_vm9, %v1064_v26, %v1066_v10  ;;  %2027 = vmatmul.mubr.msk.bf16.vlgmr.msra.gmra.mrb[0].mxu1 %vm796_vm2, %v941_v25 }
 0x221   : > { %2031 = vmatpush3.bf16.msra.mxu1 %v1076_v28  ;;  %2075 = vmatpush3.bf16.msra.mxu0 %v1465_v27 }
 0x222   : > { %2080 = vmatprep.subr.bf16.mxu0 %v2622_v33  ;;  %2032 = vmatprep.subr.bf16.mxu1 %v2622_v33 }
 0x223   : > { %v1541_v29 = vpop.permute.xlu0 %1540  ;;  %v1539_v30 = vpop.permute.xlu1 %1538  ;;  %2036 = vmatprep.mubr.msk.bf16.mxu1 %vm2631_vm1, %v2622_v33 }
 0x224   : > { %v1551_v34 = vsel %vm1550_vm10, %v1539_v30, %v1541_v29  ;;  %2077 = vmatmul.mubr.msk.bf16.vlgmr.msra.gmra.mrb[0].mxu0 %vm796_vm2, %v1416_v39 }
 0x225   : > { %2081 = vmatpush3.bf16.msra.mxu0 %v1551_v34  ;;  %2086 = vmatprep.mubr.msk.bf16.mxu0 %vm2631_vm1, %v2622_v33 }
 0x226   : > { %2082 = vmatprep.subr.bf16.mxu0 %v2622_v33 }
 0x227   : > { %v1070_v35 = vpop.permute.xlu0 %1069  ;;  %v1068_v37 = vpop.permute.xlu1 %1067 }
 0x228   : > { %v1077_v40 = vsel %vm1075_vm9, %v1068_v37, %v1070_v35 }
 0x229   : > { %2033 = vmatpush3.bf16.msra.mxu1 %v1077_v40 }
 0x22a   : > { %2034 = vmatprep.subr.bf16.mxu1 %v2622_v33 }
 0x22b   : > { %v1545_v42 = vpop.permute.xlu0 %1544  ;;  %v1543_v43 = vpop.permute.xlu1 %1542 }
 0x22c   : > { %v1552_v45 = vsel %vm1550_vm10, %v1543_v43, %v1545_v42 }
 0x22d   : > { %2035 = vmatpush3.bf16.msra.mxu1 %v1085_v44  ;;  %2083 = vmatpush3.bf16.msra.mxu0 %v1552_v45 }
 0x22e   : > { %2084 = vmatprep.subr.bf16.mxu0 %v2622_v33 }
 0x22f   : > { %v1549_v47 = vpop.permute.xlu0 %1548  ;;  %v1547_v48 = vpop.permute.xlu1 %1546 }
 0x230   : > { %v1553_v31 = vsel %vm1550_vm10, %v1547_v48, %v1549_v47  ;;  %2037 = vmatmul.mubr.msk.bf16.vlgmr.msra.gmra.mrb[0].mxu1 %vm796_vm2, %v1036_v46 }
 0x231   : > { %v1560_v32 = vsel %vm800_vm0, %v1553_v31, 0 }
 0x232   : > { %2085 = vmatpush3.bf16.msra.mxu0 %v1560_v32 }
 0x235   : > { %2087 = vmatmul.mubr.msk.bf16.vlgmr.msra.gmra.mrb[0].mxu0 %vm796_vm2, %v1511_v49 }
 0x303   : > { %v1121_v50 = vpop.f32.mrb[0].mxu1 }
 0x304   : > { %v2038_v51 = vpop.f32.mrb[1].mxu1 }
 0x305   : > { %v1124_v52 = vpop.f32.mrb[2].mxu1 }
 0x306   : > { %v2039_v33 = vpop.f32.mrb[3].mxu1 }
 0x308   : > { %v1596_v53 = vpop.f32.mrb[0].mxu0 }
 0x309   : > { %v2090_v55 = vadd.f32 %v1596_v53, %v1121_v50  ;;  %v2088_v56 = vpop.f32.mrb[1].mxu0 }
 0x30a   : > { %v1599_v57 = vpop.f32.mrb[2].mxu0 }
 0x30b   : > { %v1606_v16 = vpack.c.bf16 %v2090_v55, %v2090_v55  ;;  %v2089_v58 = vpop.f32.mrb[3].mxu0  ;;  %v1613_v59 = vmul.f32 %v2090_v55, %v1947_v54 }
 0x30d   : > { %1614 = vadd.xlane.f32.xlu1 %v1613_v59  ;;  %v1626_v60 = vmul.f32 %v2090_v55, %v1613_v59  ;;  %1607 = vst [vmem:[%s343_s21] sm:$0xf] %v1606_v16 }
 0x30f   : > { %1627 = vadd.xlane.f32.xlu0 %v1626_v60 }
 0x310   : > { %2434 = shalt.err (!%p2431_p8)
}
 0x311   : > { %s2435_s8 = scalar_lea.hbm %s3166_s13, 64  ;;  %s2439_s15 = scalar_lea.hbm %s3345_s23, 384 }
 0x312   : > { %p2436_p12 = scmp.ne.s32.totalorder %s3166_s13, %s2435_s8  ;;  %p2440_p6 = scmp.lt.u32.totalorder %s3166_s13, %s3345_s23 }
 0x313   : > { %p2441_p0 = scmp.lt.u32.totalorder %s2439_s15, %s2435_s8  ;;  %p2443_p4 = scmp.lt.u32.totalorder %s2435_s8, %s3166_s13 }
 0x314   : > { %p2437_p2 = pnand %p2436_p12, %p3346_p1 }
 0x315   : > { %p2442_p7 = por %p2441_p0, %p2440_p6 }
 0x316   : > { %p2438_p10 = pneg %p2437_p2 }
 0x317   : > { %p2444_p13 = por %p2443_p4, %p2442_p7 }
 0x319   : > { %p2445_p3 = pnand %p2444_p13, %p2438_p10 }
 0x31b   : > { %2448 = shalt.err (!%p2445_p3)
}
 0x31c   : > { %2132 = dma.vmem_to_hbm [thread:$0]  (%p3346_p1), %s1661_s17, 64, %s3166_s13, %s1637_s24   ;;  %v1618_v61 = vand.u32 127, %v392_v36  ;;  %vm1624_vm11 = vcmask 57344  }
 0x31d   : > { %s1641_s22 = sand.u32 1, %s2730_s12   ;;  %s1950_s6 = sshll.u32 %s3160_s7, 4 }
 0x31e   : > { %v1621_v62 = vsub.s32 %v1618_v61, %v2962_v38  ;;  %s349_s5 = scalar_lea.vmem [#allocation11], %s3154_s1  ;;  %s3319_s30 = scalar_lea.vmem [#allocation13], %s3154_s1 }
 0x31f   : > { %s1675_s14 = sshll.u32 %s349_s5, 4  ;;  %s1690_s8 = sshll.u32 %s3319_s30, 4  ;;  %s3199_s14 = int_to_ptr.vmem [resolvable:$true] %s1675_s14  ;;  %s3207_s8 = int_to_ptr.vmem [resolvable:$true] %s1690_s8 }
 0x320   : > { %s3347_s15 = sld [smem:[#allocation26_spill]]  ;;  %s3348_s13 = sld [smem:[#allocation27_spill]] }
 0x321   : > { %s3209_s24 = scalar_lea.sflag [#allocation12], %s1641_s22  ;;  %s2449_s16 = scalar_lea.vmem %s3199_s14, 16 }
 0x322   : > { %p2450_p9 = scmp.ne.s32.totalorder %s3199_s14, %s2449_s16  ;;  %s2634_s19 = smov [#allocation11]  }
 0x323   : > { %s2453_s21 = sshll.u32 %s2634_s19, 4  ;;  %s2454_s21 = int_to_ptr.vmem [resolvable:$false] %s2453_s21 }
 0x324   : > { %p2451_p11 = pnand %p2450_p9, %p3346_p1  ;;  %s2455_s30 = scalar_lea.vmem %s2454_s21, 32 }
 0x325   : > { %p2456_p8 = scmp.lt.s32.totalorder %s3199_s14, %s2454_s21  ;;  %p2457_p12 = scmp.lt.s32.totalorder %s2455_s30, %s2449_s16 }
 0x326   : > { %s3197_s20 = scalar_lea.hbm %s3347_s15, %s1950_s6  ;;  %s3205_s17 = scalar_lea.hbm %s3348_s13, %s1950_s6 }
 0x327   : > { %p2452_p5 = pneg %p2451_p11  ;;  %p2458_p2 = por %p2457_p12, %p2456_p8 }
 0x329   : > { %p2459_p10 = pnand %p2458_p2, %p2452_p5 }
 0x39a   : > { %v1615_v63 = vpop.xlane.xlu1 %1614 }
 0x39b   : > { %v1622_v0 = vrot.slane %v1615_v63, %v1621_v62 }
 0x39c   : > { %v1628_v36 = vpop.xlane.xlu0 %1627 }
 0x39d   : > { %v1633_v38 = vrot.slane %v1628_v36, %v1621_v62  ;;  %1625 = vst.msk [vmem:[%s349_s5] sm:$0x1] %vm1624_vm11, %v1622_v0 }
 0x39e   : > { %2462 = shalt.err (!%p2459_p10)
}
 0x39f   : > { %s2463_s22 = scalar_lea.hbm %s3197_s20, 16  ;;  %s2467_s12 = scalar_lea.hbm %s3347_s15, 96 }
 0x3a0   : > { %p2464_p6 = scmp.ne.s32.totalorder %s3197_s20, %s2463_s22  ;;  %p2468_p4 = scmp.lt.u32.totalorder %s3197_s20, %s3347_s15 }
 0x3a1   : > { %p2469_p13 = scmp.lt.u32.totalorder %s2467_s12, %s2463_s22  ;;  %p2471_p9 = scmp.lt.u32.totalorder %s2463_s22, %s3197_s20 }
 0x3a2   : > { %p2465_p0 = pnand %p2464_p6, %p3346_p1 }
 0x3a3   : > { %p2470_p3 = por %p2469_p13, %p2468_p4 }
 0x3a4   : > { %p2466_p7 = pneg %p2465_p0 }
 0x3a5   : > { %p2472_p11 = por %p2471_p9, %p2470_p3 }
 0x3a7   : > { %p2473_p5 = pnand %p2472_p11, %p2466_p7 }
 0x3a9   : > { %2476 = shalt.err (!%p2473_p5)
}
 0x3aa   : > { %2133 = dma.vmem_to_hbm [thread:$0]  (%p3346_p1), %s3199_s14, 16, %s3197_s20, %s3209_s24  }
 0x3ab   : > { %s3349_s30 = scalar_lea.vmem [#allocation13], %s3154_s1  ;;  %s2477_s16 = scalar_lea.vmem %s3207_s8, 16 }
 0x3ac   : > { %1635 = vst.msk [vmem:[%s3349_s30] sm:$0x1] %vm1624_vm11, %v1633_v38  ;;  %p2478_p8 = scmp.ne.s32.totalorder %s3207_s8, %s2477_s16  ;;  %s2635_s21 = smov [#allocation13]  }
 0x3ad   : > { %s2481_s22 = sshll.u32 %s2635_s21, 4  ;;  %s2482_s22 = int_to_ptr.vmem [resolvable:$false] %s2481_s22 }
 0x3ae   : > { %p2479_p12 = pnand %p2478_p8, %p3346_p1  ;;  %s2483_s6 = scalar_lea.vmem %s2482_s22, 32 }
 0x3af   : > { %p2484_p10 = scmp.lt.s32.totalorder %s3207_s8, %s2482_s22  ;;  %p2485_p6 = scmp.lt.s32.totalorder %s2483_s6, %s2477_s16 }
 0x3b0   : > { %p2480_p2 = pneg %p2479_p12 }
 0x3b1   : > { %p2486_p0 = por %p2485_p6, %p2484_p10 }
 0x3b3   : > { %p2487_p7 = pnand %p2486_p0, %p2480_p2 }
 0x3b5   : > { %2490 = shalt.err (!%p2487_p7)
}
 0x3b6   : > { %s2491_s1 = scalar_lea.hbm %s3205_s17, 16  ;;  %s2495_s5 = scalar_lea.hbm %s3348_s13, 96 }
 0x3b7   : > { %p2492_p4 = scmp.ne.s32.totalorder %s3205_s17, %s2491_s1  ;;  %p2496_p9 = scmp.lt.u32.totalorder %s3205_s17, %s3348_s13 }
 0x3b8   : > { %p2497_p11 = scmp.lt.u32.totalorder %s2495_s5, %s2491_s1  ;;  %p2499_p8 = scmp.lt.u32.totalorder %s2491_s1, %s3205_s17 }
 0x3b9   : > { %p2493_p13 = pnand %p2492_p4, %p3346_p1 }
 0x3ba   : > { %p2498_p5 = por %p2497_p11, %p2496_p9 }
 0x3bb   : > { %p2494_p3 = pneg %p2493_p13 }
 0x3bc   : > { %p2500_p12 = por %p2499_p8, %p2498_p5 }
 0x3be   : > { %p2501_p2 = pnand %p2500_p12, %p2494_p3 }
 0x3c0   : > { %2504 = shalt.err (!%p2501_p2)
}
 0x3c1   : > { %2134 = dma.vmem_to_hbm [thread:$0]  (%p3346_p1), %s3207_s8, 16, %s3205_s17, %s3209_s24  }
 0x3c2 PF: > { %s3350_s19 = sld [smem:[#allocation18_spill]]  ;;  %s3351_s30 = sld [smem:[#allocation21_spill]] }
 0x3c3   : > { %p2164_p10 = scmp.ge.s32.totalorder %s2607_s11, 2 }
 0x3c8   : > { %s1702_s16 = sand.u32 1, %s3350_s19   ;;  %p3352_p6 = scmp.ne.s32.totalorder %s3351_s30, 0 }
 0x3c9   : > { %s1703_s21 = scalar_lea.sflag [#allocation6], %s1702_s16 }
 0x3ca   : > { %p2150_p0 = pnand %p2164_p10, %p3352_p6 }
 0x3cc   : > { %2558 = dma.done.wait (!%p2150_p0), %s1703_s21, 64  }
 0x3cd   : > { %2560 = vsyncadd (!%p2150_p0), %s1703_s21, 4294967232  ;;  %s3353_s22 = sadd.s32 4294967294, %s2607_s11  }
 0x3ce   : > { %s1711_s6 = sand.u32 1, %s3353_s22  }
 0x3cf   : > { %s1712_s1 = scalar_lea.sflag [#allocation12], %s1711_s6 }
 0x3d0   : > { %2562 = dma.done.wait (!%p2150_p0), %s1712_s1, 32  }
 0x3d1   : > { %2564 = vsyncadd (!%p2150_p0), %s1712_s1, 4294967264  ;;  %s28_s11 = sadd.s32 1, %s2607_s11   ;;  %s3354_s30 = sld [smem:[#allocation19_spill]] }
 0x3d2   : > { %p25_p1 = scmp.ge.s32.totalorder %s28_s11, 8   ;;  %s3355_s18 = sld [smem:[#allocation22_spill]] }
 0x3d3   : > { %s3356_s17 = smov %s3371_s27  ;;  %s3357_s24 = smov %s2571_s25 }
 0x3d4   : > { %s3358_s25 = smov %s2575_s26  ;;  %s3359_s26 = smov %s2853_s9 }
 0x3d5   : > { %s3360_s27 = smov %s2583_s28  ;;  %s3361_s28 = smov %s2587_s29 }
 0x3d6   : > { %s3362_s29 = smov %s2848_s2  ;;  %s3363_s8 = smov %s2603_s10 }
 0x3d7   : > { %s3365_s10 = smov %s3356_s17  ;;  %27 = sbr.rel (!%p25_p1) target bundleno = 18 (0x12), region = 135 }
 0x3d8   : > { %s3364_s9 = smov %s3355_s18 }
 0x3de   :  { %1724 = vsyncpa [#allocation5], 1 }
 0x3df   :  { %1726 = vsyncpa [#allocation5 + $0x1], 1 }
 0x3e0   :  { %1727 = vsyncpa [#allocation8], 1 }
 0x3e1   :  { %1728 = vsyncpa [#allocation6], 1 }
 0x3e2   :  { %1730 = vsyncpa [#allocation6 + $0x1], 1 }
 0x3e3   :  { %1731 = vsyncpa [#allocation12], 1 }
 0x3e4   :  { %1733 = vsyncpa [#allocation12 + $0x1], 1 }

</bundles_post_ra>
